<compile_context>
chip_gen: v5e
topology: v5e:2x2
jax: 0.10.0
libtpu: 0.0.40
codegen_flags: <defaults>
</compile_context>

<pallas_src>
import math

import jax
import jax.numpy as jnp
from jax.experimental import pallas as pl
from jax.experimental.pallas import tpu as pltpu


_NEG_FILL = float(-(1 << 32))        # matches torch.masked_fill(-(1 << 32))
_VMEM_LIMIT = 32 * 1024 * 1024       # safe scoped-VMEM target on v5e/v6e/v7x
_RESIDENT_BUDGET = 24 * 1024 * 1024  # K/V residency threshold (incl. slack)


def _round_up(x, m):
    return (x + m - 1) // m * m


def _pad2d(x, rows, cols):
    r, c = x.shape
    if r == rows and c == cols:
        return x
    return jnp.pad(x, ((0, rows - r), (0, cols - c)))


def _make_kernel(*, scale, m_actual, tm, has_mask, need_kv_pad_mask,
                 kv_resident):
    """Builds the flash-attention kernel (mask operand only when has_mask)."""

    def kernel(*refs):
        if has_mask:
            (main_ref, wqt_ref, bq_ref, k_ref, v_ref, fix_ref, mask_ref,
             o_ref, q_sc, m_sc, l_sc, acc_sc) = refs
        else:
            (main_ref, wqt_ref, bq_ref, k_ref, v_ref, fix_ref,
             o_ref, q_sc, m_sc, l_sc, acc_sc) = refs
            mask_ref = None

        kv = pl.program_id(1)
        nkv = pl.num_programs(1)

        @pl.when(kv == 0)
        def _():
            # Project this query tile once (bf16 MXU, f32 acc); keep the scaled
            # result resident in a bf16 VMEM scratch for all kv steps.
            q = jnp.dot(main_ref[...], wqt_ref[...],
                        preferred_element_type=jnp.float32) + bq_ref[...]
            q_sc[...] = (q * jnp.float32(scale)).astype(jnp.bfloat16)
            m_sc[...] = jnp.full_like(m_sc, -jnp.inf)
            l_sc[...] = jnp.zeros_like(l_sc)
            acc_sc[...] = jnp.zeros_like(acc_sc)

        if kv_resident:
            # K/V live whole in VMEM (grid-invariant); slice the current chunk.
            off = pl.multiple_of(kv * tm, tm)
            k_tile = k_ref[pl.ds(off, tm), :]
            v_tile = v_ref[pl.ds(off, tm), :]
        else:
            k_tile = k_ref[...]
            v_tile = v_ref[...]

        # logits = (Q*scale) . K^T  -- contract last dims (no transpose), bf16 MXU.
        s = jax.lax.dot_general(
            q_sc[...], k_tile,
            dimension_numbers=(((1,), (1,)), ((), ())),
            preferred_element_type=jnp.float32)

        if mask_ref is not None:
            # Compare the packed int8 mask directly (no int8 -> f32 unpack).
            s = jnp.where(mask_ref[...] != 0, jnp.float32(_NEG_FILL), s)

        if need_kv_pad_mask:
            # Padded key rows only exist in the last kv tile; use a cheap
            # [1, TM] lane-index row (all-False on earlier steps).
            lane = jax.lax.broadcasted_iota(jnp.int32, (1, tm), 1)
            pad = (kv * tm + lane) >= m_actual
            s = jnp.where(pad, -jnp.inf, s)

        # ----- online softmax update (f32 stats) -----
        m_prev = m_sc[...]
        m_new = jnp.maximum(m_prev, jnp.max(s, axis=-1, keepdims=True))
        alpha = jnp.exp(m_prev - m_new)
        p = jnp.exp(s - m_new)
        l_sc[...] = alpha * l_sc[...] + jnp.sum(p, axis=-1, keepdims=True)

        # Fold diag(fix) into the (unnormalized) probabilities, then bf16 MXU PV.
        pv = jnp.dot((p * fix_ref[...]).astype(jnp.bfloat16), v_tile,
                     preferred_element_type=jnp.float32)
        acc_sc[...] = alpha * acc_sc[...] + pv
        m_sc[...] = m_new

        @pl.when(kv == nkv - 1)
        def _():
            o_ref[...] = (acc_sc[...] *
                          pl.reciprocal(l_sc[...], approx=True)
                          ).astype(o_ref.dtype)

    return kernel


def attention_forward(main_feat, other_feat, fix_feat, wq, bq, wk, bk,
                      mask=None):
    """Pallas equivalent of Attention.forward.

    main_feat: [N, Qdim] f32, other_feat: [M, Kdim] f32, fix_feat: [M] f32
    wq: [mid, Qdim], bq: [mid], wk: [mid, Kdim], bk: [mid]  (PyTorch Linear)
    mask: optional [N, M] bool
    """
    f32, bf16 = jnp.float32, jnp.bfloat16
    N, Qdim = main_feat.shape
    M, Kdim = other_feat.shape
    mid = wq.shape[0]

    # ---- adaptive tile sizes ----
    np128 = _round_up(N, 128)
    if np128 >= 1024:
        TQ = 512
    elif np128 >= 512:
        TQ = 256
    else:
        TQ = 128
    Np = _round_up(N, TQ)

    Mp = _round_up(M, 128)
    nb = Mp // 128
    TM = 128
    for c in (4, 3, 2):                 # largest 128-multiple (<=512) dividing Mp
        if nb % c == 0:
            TM = 128 * c
            break

    Qp, Kp = _round_up(Qdim, 128), _round_up(Kdim, 128)
    midp = _round_up(mid, 128)

    # Hoist the K projection (one small XLA matmul), then cast operands to bf16.
    k_proj = other_feat.astype(f32) @ wk.T.astype(f32) + bk.astype(f32)

    main_p = _pad2d(main_feat.astype(bf16), Np, Qp)
    wqt_p = _pad2d(wq.T.astype(bf16), Qp, midp)
    bq_p = _pad2d(bq.reshape(1, mid).astype(f32), 1, midp)
    k_p = _pad2d(k_proj.astype(bf16), Mp, midp)
    v_p = _pad2d(other_feat.astype(bf16), Mp, Kp)
    fix_p = _pad2d(fix_feat.reshape(1, M).astype(f32), 1, Mp)

    has_mask = mask is not None

    # ---- K/V residency decision (conservative: assume 2x buffering) ----
    resident_bytes = 2 * 2 * (Mp * midp + Mp * Kp)          # bf16 K + V
    per_tile_bytes = (2 * (TQ * Qp * 2 + TQ * Kp * 4 + TM * 4)
                      + 2 * (Qp * midp * 2 + midp * 4)
                      + (TQ * midp * 2 + TQ * Kp * 4 + 2 * TQ * 4))
    if has_mask:
        per_tile_bytes += 2 * TQ * TM
    slack = 6 * 1024 * 1024                                  # s/p intermediates
    kv_resident = (resident_bytes + per_tile_bytes + slack) <= _RESIDENT_BUDGET

    if kv_resident:
        k_spec = pl.BlockSpec((Mp, midp), lambda i, j: (0, 0))   # fetched once
        v_spec = pl.BlockSpec((Mp, Kp), lambda i, j: (0, 0))     # fetched once
    else:
        k_spec = pl.BlockSpec((TM, midp), lambda i, j: (j, 0))
        v_spec = pl.BlockSpec((TM, Kp), lambda i, j: (j, 0))

    inputs = [main_p, wqt_p, bq_p, k_p, v_p, fix_p]
    in_specs = [
        pl.BlockSpec((TQ, Qp), lambda i, j: (i, 0)),     # main_feat tile
        pl.BlockSpec((Qp, midp), lambda i, j: (0, 0)),   # Wq^T (whole)
        pl.BlockSpec((1, midp), lambda i, j: (0, 0)),    # bq
        k_spec,                                          # K (resident or tile)
        v_spec,                                          # V (= other_feat)
        pl.BlockSpec((1, TM), lambda i, j: (0, j)),      # fix row chunk
    ]
    if has_mask:
        mask_p = _pad2d(mask.astype(jnp.int8), Np, Mp)   # int8: 4x less traffic
        inputs.append(mask_p)
        in_specs.append(pl.BlockSpec((TQ, TM), lambda i, j: (i, j)))

    kernel = _make_kernel(scale=1.0 / math.sqrt(mid), m_actual=M, tm=TM,
                          has_mask=has_mask, need_kv_pad_mask=(Mp != M),
                          kv_resident=kv_resident)

    n_q_tiles = Np // TQ
    grid = (n_q_tiles, Mp // TM)

    flops = (2 * Np * Qp * midp          # Q projection
             + 2 * Np * Mp * midp        # Q K^T
             + 2 * Np * Mp * Kp)         # P V
    kv_stream_factor = 1 if kv_resident else n_q_tiles
    bytes_accessed = (2 * Np * Qp + 2 * Qp * midp + 4 * midp        # bf16 in
                      + kv_stream_factor * 2 * (Mp * midp + Mp * Kp)
                      + n_q_tiles * 4 * Mp                          # fix row
                      + 4 * Np * Kp)                                # output
    if has_mask:
        bytes_accessed += Np * Mp        # int8 mask stream

    out_p = pl.pallas_call(
        kernel,
        out_shape=jax.ShapeDtypeStruct((Np, Kp), f32),
        grid_spec=pltpu.PrefetchScalarGridSpec(
            num_scalar_prefetch=0,
            grid=grid,
            in_specs=in_specs,
            out_specs=pl.BlockSpec((TQ, Kp), lambda i, j: (i, 0)),
            scratch_shapes=[
                pltpu.VMEM((TQ, midp), bf16),  # projected & scaled Q tile
                pltpu.VMEM((TQ, 1), f32),      # running max
                pltpu.VMEM((TQ, 1), f32),      # running denominator
                pltpu.VMEM((TQ, Kp), f32),     # output accumulator
            ],
        ),
        compiler_params=pltpu.CompilerParams(
            dimension_semantics=("parallel", "arbitrary"),
            vmem_limit_bytes=_VMEM_LIMIT),
        cost_estimate=pl.CostEstimate(
            flops=int(flops), transcendentals=int(Np * Mp),
            bytes_accessed=int(bytes_accessed)),
    )(*inputs)

    return out_p[:N, :Kdim]


def attention_reference(main_feat, other_feat, fix_feat, wq, bq, wk, bk,
                        mask=None):
    """Pure-JAX f32 reference matching the PyTorch module exactly."""
    mid = wq.shape[0]
    Q = main_feat @ wq.T + bq
    K = other_feat @ wk.T + bk
    attn = (Q @ K.T) / math.sqrt(mid)
    if mask is not None:
        attn = jnp.where(mask, jnp.float32(_NEG_FILL), attn)
    attn = jax.nn.softmax(attn, axis=-1)
    return attn @ (jnp.diag(fix_feat) @ other_feat)


def _run_case(key, N, M, Qdim, Kdim, mid, use_mask):
    ks = jax.random.split(key, 8)
    main_feat = jax.random.normal(ks[0], (N, Qdim), dtype=jnp.float32)
    other_feat = jax.random.normal(ks[1], (M, Kdim), dtype=jnp.float32)
    fix_feat = jax.random.normal(ks[2], (M,), dtype=jnp.float32)

    bq_bound = 1.0 / math.sqrt(Qdim)
    bk_bound = 1.0 / math.sqrt(Kdim)
    wq = jax.random.uniform(ks[3], (mid, Qdim), jnp.float32, -bq_bound, bq_bound)
    bq = jax.random.uniform(ks[4], (mid,), jnp.float32, -bq_bound, bq_bound)
    wk = jax.random.uniform(ks[5], (mid, Kdim), jnp.float32, -bk_bound, bk_bound)
    bk = jax.random.uniform(ks[6], (mid,), jnp.float32, -bk_bound, bk_bound)
    mask = jax.random.bernoulli(ks[7], 0.2, (N, M)) if use_mask else None

    out = jax.block_until_ready(
        attention_forward(main_feat, other_feat, fix_feat, wq, bq, wk, bk, mask))
    ref = attention_reference(main_feat, other_feat, fix_feat, wq, bq, wk, bk, mask)
    assert out.shape == ref.shape, (out.shape, ref.shape)
    err = float(jnp.max(jnp.abs(out - ref)))
    # bf16 MXU operands -> tolerance loosened vs. the pure-f32 check.
    assert jnp.allclose(out, ref, atol=3e-2, rtol=3e-2), (
        f"mismatch N={N} M={M} mask={use_mask} max_abs_err={err}")


if __name__ == "__main__":
    key = jax.random.PRNGKey(0)
    k1, k2, k3, k4 = jax.random.split(key, 4)

    # Small shapes consistent with the module (single tile, with & without mask).
    _run_case(k1, N=8, M=16, Qdim=32, Kdim=32, mid=32, use_mask=False)
    _run_case(k2, N=8, M=16, Qdim=32, Kdim=32, mid=32, use_mask=True)
    # Multi-tile cases: exercise online softmax across kv chunks, padding of
    # every dim, the resident-K/V slicing path, and the parallel query axis.
    _run_case(k3, N=200, M=300, Qdim=48, Kdim=56, mid=40, use_mask=True)
    _run_case(k4, N=136, M=260, Qdim=64, Kdim=96, mid=64, use_mask=False)

    print("KERNEL_OK")
</pallas_src>

<mosaic_0001>
module attributes {stable_mosaic.version = 11 : i64} {
  func.func @kernel(%arg0: i32, %arg1: i32, %arg2: memref<128x128xbf16, #tpu.memory_space<vmem>>, %arg3: memref<128x128xbf16, #tpu.memory_space<vmem>>, %arg4: memref<1x128xf32, #tpu.memory_space<vmem>>, %arg5: memref<128x128xbf16, #tpu.memory_space<vmem>>, %arg6: memref<128x128xbf16, #tpu.memory_space<vmem>>, %arg7: memref<1x128xf32, #tpu.memory_space<vmem>>, %arg8: memref<128x128xf32, #tpu.memory_space<vmem>>, %arg9: memref<128x128xbf16, #tpu.memory_space<vmem>>, %arg10: memref<128x1xf32, #tpu.memory_space<vmem>>, %arg11: memref<128x1xf32, #tpu.memory_space<vmem>>, %arg12: memref<128x128xf32, #tpu.memory_space<vmem>>) attributes {dimension_semantics = [#tpu.dimension_semantics<parallel>, #tpu.dimension_semantics<arbitrary>], iteration_bounds = array<i64: 1, 1>, scalar_prefetch = 0 : i64, scratch_operands = 4 : i64, tpu.core_type = #tpu.core_type<tc>, window_params = [{transform_indices = @transform_0, window_bounds = array<i64: 128, 128>}, {pipeline_mode = #tpu.pipeline_mode<synchronous>, transform_indices = @transform_1, window_bounds = array<i64: 128, 128>}, {pipeline_mode = #tpu.pipeline_mode<synchronous>, transform_indices = @transform_2, window_bounds = array<i64: 1, 128>}, {pipeline_mode = #tpu.pipeline_mode<synchronous>, transform_indices = @transform_3, window_bounds = array<i64: 128, 128>}, {pipeline_mode = #tpu.pipeline_mode<synchronous>, transform_indices = @transform_4, window_bounds = array<i64: 128, 128>}, {transform_indices = @transform_5, window_bounds = array<i64: 1, 128>}, {transform_indices = @transform_6, window_bounds = array<i64: 128, 128>}]} {
    %c0_i32 = arith.constant 0 : i32
    %0 = arith.cmpi eq, %arg1, %c0_i32 : i32
    %1 = arith.extui %0 : i1 to i32
    %c0_i32_0 = arith.constant 0 : i32
    %2 = arith.cmpi ne, %1, %c0_i32_0 : i32
    scf.if %2 {
      %c0_25 = arith.constant 0 : index
      %c0_26 = arith.constant 0 : index
      %50 = vector.load %arg2[%c0_25, %c0_26] : memref<128x128xbf16, #tpu.memory_space<vmem>>, vector<128x128xbf16>
      %c0_27 = arith.constant 0 : index
      %c0_28 = arith.constant 0 : index
      %51 = vector.load %arg3[%c0_27, %c0_28] : memref<128x128xbf16, #tpu.memory_space<vmem>>, vector<128x128xbf16>
      %cst_29 = arith.constant dense<0.000000e+00> : vector<128x128xf32>
      %52 = tpu.matmul %50, %51, %cst_29 {dimension_numbers = #tpu.dot_dimension_numbers<[1], [0], [0], [1], [0, 0, 1, 1], [], []>} : vector<128x128xbf16>, vector<128x128xbf16>, vector<128x128xf32> -> vector<128x128xf32>
      %c0_30 = arith.constant 0 : index
      %c0_31 = arith.constant 0 : index
      %53 = vector.load %arg4[%c0_30, %c0_31] : memref<1x128xf32, #tpu.memory_space<vmem>>, vector<1x128xf32>
      %54 = vector.broadcast %53 : vector<1x128xf32> to vector<128x128xf32>
      %55 = arith.addf %52, %54 : vector<128x128xf32>
      %cst_32 = arith.constant 0.176776692 : f32
      %56 = vector.broadcast %cst_32 : f32 to vector<128x128xf32>
      %57 = arith.mulf %55, %56 : vector<128x128xf32>
      %58 = arith.truncf %57 : vector<128x128xf32> to vector<128x128xbf16>
      %c0_33 = arith.constant 0 : index
      %c0_34 = arith.constant 0 : index
      %59 = vector.load %arg9[%c0_33, %c0_34] : memref<128x128xbf16, #tpu.memory_space<vmem>>, vector<128x128xbf16>
      tpu.vector_store %arg9[%c0_33, %c0_34], %58 {strides = array<i32>} : memref<128x128xbf16, #tpu.memory_space<vmem>>, vector<128x128xbf16>,
      %cst_35 = arith.constant 0xFF800000 : f32
      %60 = vector.broadcast %cst_35 : f32 to vector<128x1xf32>
      %c0_36 = arith.constant 0 : index
      %c0_37 = arith.constant 0 : index
      %61 = vector.load %arg10[%c0_36, %c0_37] : memref<128x1xf32, #tpu.memory_space<vmem>>, vector<128x1xf32>
      tpu.vector_store %arg10[%c0_36, %c0_37], %60 {strides = array<i32>} : memref<128x1xf32, #tpu.memory_space<vmem>>, vector<128x1xf32>,
      %cst_38 = arith.constant 0.000000e+00 : f32
      %62 = vector.broadcast %cst_38 : f32 to vector<128x1xf32>
      %c0_39 = arith.constant 0 : index
      %c0_40 = arith.constant 0 : index
      %63 = vector.load %arg11[%c0_39, %c0_40] : memref<128x1xf32, #tpu.memory_space<vmem>>, vector<128x1xf32>
      tpu.vector_store %arg11[%c0_39, %c0_40], %62 {strides = array<i32>} : memref<128x1xf32, #tpu.memory_space<vmem>>, vector<128x1xf32>,
      %cst_41 = arith.constant 0.000000e+00 : f32
      %64 = vector.broadcast %cst_41 : f32 to vector<128x128xf32>
      %c0_42 = arith.constant 0 : index
      %c0_43 = arith.constant 0 : index
      %65 = vector.load %arg12[%c0_42, %c0_43] : memref<128x128xf32, #tpu.memory_space<vmem>>, vector<128x128xf32>
      tpu.vector_store %arg12[%c0_42, %c0_43], %64 {strides = array<i32>} : memref<128x128xf32, #tpu.memory_space<vmem>>, vector<128x128xf32>,
    } else {
    }
    %c128_i32 = arith.constant 128 : i32
    %3 = arith.muli %arg1, %c128_i32 : i32
    %4 = tpu.assume_multiple %3, 128 : i32
    %5 = arith.index_cast %4 : i32 to index
    %c0 = arith.constant 0 : index
    %6 = vector.load %arg5[%5, %c0] : memref<128x128xbf16, #tpu.memory_space<vmem>>, vector<128x128xbf16>
    %7 = arith.index_cast %4 : i32 to index
    %c0_1 = arith.constant 0 : index
    %8 = vector.load %arg6[%7, %c0_1] : memref<128x128xbf16, #tpu.memory_space<vmem>>, vector<128x128xbf16>
    %c0_2 = arith.constant 0 : index
    %c0_3 = arith.constant 0 : index
    %9 = vector.load %arg9[%c0_2, %c0_3] : memref<128x128xbf16, #tpu.memory_space<vmem>>, vector<128x128xbf16>
    %cst = arith.constant dense<0.000000e+00> : vector<128x128xf32>
    %10 = tpu.matmul %9, %6, %cst {dimension_numbers = #tpu.dot_dimension_numbers<[1], [1], [0], [0], [0, 0, 1, 0], [], []>} : vector<128x128xbf16>, vector<128x128xbf16>, vector<128x128xf32> -> vector<128x128xf32>
    %11 = tpu.iota {dimensions = array<i32: 1>} : vector<1x128xi32>
    %c128_i32_4 = arith.constant 128 : i32
    %12 = arith.muli %arg1, %c128_i32_4 : i32
    %13 = vector.broadcast %12 : i32 to vector<1x128xi32>
    %14 = arith.addi %13, %11 : vector<1x128xi32>
    %c16_i32 = arith.constant 16 : i32
    %15 = vector.broadcast %c16_i32 : i32 to vector<1x128xi32>
    %16 = arith.cmpi sge, %14, %15 : vector<1x128xi32>
    %cst_5 = arith.constant 0xFF800000 : f32
    %17 = vector.shape_cast %16 : vector<1x128xi1> to vector<1x128xi1>
    %18 = vector.broadcast %17 : vector<1x128xi1> to vector<128x128xi1>
    %19 = vector.broadcast %cst_5 : f32 to vector<128x128xf32>
    %20 = arith.select %18, %19, %10 : vector<128x128xi1>, vector<128x128xf32>
    %c0_6 = arith.constant 0 : index
    %c0_7 = arith.constant 0 : index
    %21 = vector.load %arg10[%c0_6, %c0_7] : memref<128x1xf32, #tpu.memory_space<vmem>>, vector<128x1xf32>
    %cst_8 = arith.constant dense<0xFF800000> : vector<128xf32>
    %22 = vector.multi_reduction <maximumf>, %20, %cst_8 [1] : vector<128x128xf32> to vector<128xf32>
    %23 = vector.shape_cast %22 : vector<128xf32> to vector<128x1xf32>
    %24 = arith.maximumf %21, %23 : vector<128x1xf32>
    %25 = arith.subf %21, %24 : vector<128x1xf32>
    %26 = math.exp %25 : vector<128x1xf32>
    %27 = vector.broadcast %24 : vector<128x1xf32> to vector<128x128xf32>
    %28 = arith.subf %20, %27 : vector<128x128xf32>
    %29 = math.exp %28 : vector<128x128xf32>
    %c0_9 = arith.constant 0 : index
    %c0_10 = arith.constant 0 : index
    %30 = vector.load %arg11[%c0_9, %c0_10] : memref<128x1xf32, #tpu.memory_space<vmem>>, vector<128x1xf32>
    %31 = arith.mulf %26, %30 : vector<128x1xf32>
    %cst_11 = arith.constant dense<0.000000e+00> : vector<128xf32>
    %32 = vector.multi_reduction <add>, %29, %cst_11 [1] : vector<128x128xf32> to vector<128xf32>
    %33 = vector.shape_cast %32 : vector<128xf32> to vector<128x1xf32>
    %34 = arith.addf %31, %33 : vector<128x1xf32>
    %c0_12 = arith.constant 0 : index
    %c0_13 = arith.constant 0 : index
    %35 = vector.load %arg11[%c0_12, %c0_13] : memref<128x1xf32, #tpu.memory_space<vmem>>, vector<128x1xf32>
    tpu.vector_store %arg11[%c0_12, %c0_13], %34 {strides = array<i32>} : memref<128x1xf32, #tpu.memory_space<vmem>>, vector<128x1xf32>,
    %c0_14 = arith.constant 0 : index
    %c0_15 = arith.constant 0 : index
    %36 = vector.load %arg7[%c0_14, %c0_15] : memref<1x128xf32, #tpu.memory_space<vmem>>, vector<1x128xf32>
    %37 = vector.broadcast %36 : vector<1x128xf32> to vector<128x128xf32>
    %38 = arith.mulf %29, %37 : vector<128x128xf32>
    %39 = arith.truncf %38 : vector<128x128xf32> to vector<128x128xbf16>
    %cst_16 = arith.constant dense<0.000000e+00> : vector<128x128xf32>
    %40 = tpu.matmul %39, %8, %cst_16 {dimension_numbers = #tpu.dot_dimension_numbers<[1], [0], [0], [1], [0, 0, 1, 1], [], []>} : vector<128x128xbf16>, vector<128x128xbf16>, vector<128x128xf32> -> vector<128x128xf32>
    %c0_17 = arith.constant 0 : index
    %c0_18 = arith.constant 0 : index
    %41 = vector.load %arg12[%c0_17, %c0_18] : memref<128x128xf32, #tpu.memory_space<vmem>>, vector<128x128xf32>
    %42 = vector.broadcast %26 : vector<128x1xf32> to vector<128x128xf32>
    %43 = arith.mulf %42, %41 : vector<128x128xf32>
    %44 = arith.addf %43, %40 : vector<128x128xf32>
    %c0_19 = arith.constant 0 : index
    %c0_20 = arith.constant 0 : index
    %45 = vector.load %arg12[%c0_19, %c0_20] : memref<128x128xf32, #tpu.memory_space<vmem>>, vector<128x128xf32>
    tpu.vector_store %arg12[%c0_19, %c0_20], %44 {strides = array<i32>} : memref<128x128xf32, #tpu.memory_space<vmem>>, vector<128x128xf32>,
    %c0_21 = arith.constant 0 : index
    %c0_22 = arith.constant 0 : index
    %46 = vector.load %arg10[%c0_21, %c0_22] : memref<128x1xf32, #tpu.memory_space<vmem>>, vector<128x1xf32>
    tpu.vector_store %arg10[%c0_21, %c0_22], %24 {strides = array<i32>} : memref<128x1xf32, #tpu.memory_space<vmem>>, vector<128x1xf32>,
    %c0_i32_23 = arith.constant 0 : i32
    %47 = arith.cmpi eq, %arg1, %c0_i32_23 : i32
    %48 = arith.extui %47 : i1 to i32
    %c0_i32_24 = arith.constant 0 : i32
    %49 = arith.cmpi ne, %48, %c0_i32_24 : i32
    scf.if %49 {
      %c0_25 = arith.constant 0 : index
      %c0_26 = arith.constant 0 : index
      %50 = vector.load %arg12[%c0_25, %c0_26] : memref<128x128xf32, #tpu.memory_space<vmem>>, vector<128x128xf32>
      %c0_27 = arith.constant 0 : index
      %c0_28 = arith.constant 0 : index
      %51 = vector.load %arg11[%c0_27, %c0_28] : memref<128x1xf32, #tpu.memory_space<vmem>>, vector<128x1xf32>
      %52 = tpu.reciprocal %51 {approx = true} : vector<128x1xf32> -> vector<128x1xf32>
      %53 = vector.broadcast %52 : vector<128x1xf32> to vector<128x128xf32>
      %54 = arith.mulf %50, %53 : vector<128x128xf32>
      %c0_29 = arith.constant 0 : index
      %c0_30 = arith.constant 0 : index
      %55 = vector.load %arg8[%c0_29, %c0_30] : memref<128x128xf32, #tpu.memory_space<vmem>>, vector<128x128xf32>
      tpu.vector_store %arg8[%c0_29, %c0_30], %54 {strides = array<i32>} : memref<128x128xf32, #tpu.memory_space<vmem>>, vector<128x128xf32>,
    } else {
    }
    return
  }
  func.func @transform_0(%arg0: i32, %arg1: i32) -> (i32, i32) {
    %c0_i32 = arith.constant 0 : i32
    %c0_i32_0 = arith.constant 0 : i32
    return %arg0, %c0_i32 : i32, i32
  }
  func.func @transform_1(%arg0: i32, %arg1: i32) -> (i32, i32) {
    %c0_i32 = arith.constant 0 : i32
    %c0_i32_0 = arith.constant 0 : i32
    %c0_i32_1 = arith.constant 0 : i32
    return %c0_i32, %c0_i32_0 : i32, i32
  }
  func.func @transform_2(%arg0: i32, %arg1: i32) -> (i32, i32) {
    %c0_i32 = arith.constant 0 : i32
    %c0_i32_0 = arith.constant 0 : i32
    %c0_i32_1 = arith.constant 0 : i32
    return %c0_i32, %c0_i32_0 : i32, i32
  }
  func.func @transform_3(%arg0: i32, %arg1: i32) -> (i32, i32) {
    %c0_i32 = arith.constant 0 : i32
    %c0_i32_0 = arith.constant 0 : i32
    %c0_i32_1 = arith.constant 0 : i32
    return %c0_i32, %c0_i32_0 : i32, i32
  }
  func.func @transform_4(%arg0: i32, %arg1: i32) -> (i32, i32) {
    %c0_i32 = arith.constant 0 : i32
    %c0_i32_0 = arith.constant 0 : i32
    %c0_i32_1 = arith.constant 0 : i32
    return %c0_i32, %c0_i32_0 : i32, i32
  }
  func.func @transform_5(%arg0: i32, %arg1: i32) -> (i32, i32) {
    %c0_i32 = arith.constant 0 : i32
    %c0_i32_0 = arith.constant 0 : i32
    return %c0_i32, %arg1 : i32, i32
  }
  func.func @transform_6(%arg0: i32, %arg1: i32) -> (i32, i32) {
    %c0_i32 = arith.constant 0 : i32
    %c0_i32_0 = arith.constant 0 : i32
    return %arg0, %c0_i32 : i32, i32
  }
}

</mosaic_0001>

<bundles_post_ra>
// kernel: tpu_custom_call.1
= control target key start
LH: loop header
LB: loop body
LE: loop exit
PB: predicated region body
PF: predicated region fallthrough
CT: control target
= control target key end

     0   :  { %11 = vsyncpa [#allocation7], 0  ;;  %s2377_s0 = inlined_call_operand.hbm [shape: bf16[128,128], index: 0, kind: input, shape index: {}]   ;;  %s2378_s1 = inlined_call_operand.hbm [shape: bf16[128,128], index: 1, kind: input, shape index: {}]   ;;  %s2379_s2 = inlined_call_operand.vmem [shape: f32[1,128], index: 2, kind: input, shape index: {}]   ;;  %s2380_s3 = inlined_call_operand.hbm [shape: bf16[128,128], index: 3, kind: input, shape index: {}]   ;;  %s2381_s4 = inlined_call_operand.hbm [shape: bf16[128,128], index: 4, kind: input, shape index: {}]   ;;  %s2382_s5 = inlined_call_operand.vmem [shape: f32[1,128], index: 5, kind: input, shape index: {}]   ;;  %s2383_s6 = inlined_call_operand.hbm [shape: f32[128,128], index: 6, kind: output, shape index: {}]  }
   0x1   :  { %12 = vsyncpa [#allocation10], 0 }
   0x2   :  { %13 = vsyncpa [#allocation13], 0 }
   0x3   :  { %14 = vsyncpa [#allocation8], 0  ;;  %s32_s23 = sshll.u32 %s2378_s1, 4  ;;  %s1898_s24 = smov [#allocation9]   ;;  %s33_s23 = int_to_ptr.hbm [resolvable:$true] %s32_s23 }
   0x4   :  { %s34_s25 = sshll.u32 %s1898_s24, 4  ;;  %s19_s28 = sshll.u32 %s2377_s0, 4  ;;  %s35_s25 = int_to_ptr.vmem [resolvable:$true] %s34_s25  ;;  %s20_s28 = int_to_ptr.hbm [resolvable:$true] %s19_s28 }
   0x5   :  { %s1899_s29 = smov 64   ;;  %s1900_s30 = smov 4  }
   0x6   :  { %40 = dma.hbm_to_vmem [thread:$0]  %s33_s23, 1024, %s35_s25, [#allocation10], %s1899_s29, %s1899_s29, %s1900_s30  }
   0x7   :  { %s1901_s7 = smov [#allocation6]   ;;  %s47_s11 = sshll.u32 %s2380_s3, 4  ;;  %s48_s11 = int_to_ptr.hbm [resolvable:$true] %s47_s11 }
   0x8   :  { %s21_s8 = sshll.u32 %s1901_s7, 4  ;;  %s60_s13 = sshll.u32 %s2381_s4, 4  ;;  %s22_s8 = int_to_ptr.vmem [resolvable:$true] %s21_s8  ;;  %s61_s13 = int_to_ptr.hbm [resolvable:$true] %s60_s13 }
   0x9   :  { %27 = dma.hbm_to_vmem [thread:$0]  %s20_s28, 1024, %s22_s8, [#allocation7], %s1899_s29, %s1899_s29, %s1900_s30  }
   0xa   :  { %s1902_s14 = smov [#allocation11]   ;;  %s1903_s0 = smov [#allocation12]  }
   0xb   :  { %s49_s15 = sshll.u32 %s1902_s14, 4  ;;  %s62_s16 = sshll.u32 %s1903_s0, 4  ;;  %s50_s15 = int_to_ptr.vmem [resolvable:$true] %s49_s15  ;;  %s63_s16 = int_to_ptr.vmem [resolvable:$true] %s62_s16 }
   0xc   :  { %55 = dma.hbm_to_vmem [thread:$0]  %s48_s11, 1024, %s50_s15, [#allocation10], %s1899_s29, %s1899_s29, %s1900_s30  }
   0xd   :  { %68 = dma.hbm_to_vmem [thread:$0]  %s61_s13, 1024, %s63_s16, [#allocation13], %s1899_s29, %s1899_s29, %s1900_s30  }
   0xe   :  { %1890 = dma.done.wait [#allocation7], 1024  }
   0xf   :  { %1891 = vsyncadd [#allocation7], 4294966272 }
  0x10   :  { %1892 = dma.done.wait [#allocation10], 2048  }
  0x11   :  { %1893 = vsyncadd [#allocation10], 4294965248 }
  0x12   :  { %1894 = dma.done.wait [#allocation13], 1024  }
  0x13   :  { %1895 = vsyncadd [#allocation13], 4294966272  ;;  %v1577_v0 = vld [vmem:[#allocation9 + $0x38] sm:$0xff]  ;;  %v1576_v1 = vld [vmem:[#allocation9 + $0x30] sm:$0xff]  ;;  %vm320_vm1 = vcmask 7168   ;;  %s1383_s21 = sshll.u32 %s2383_s6, 4  ;;  %s1384_s21 = int_to_ptr.hbm [resolvable:$true] %s1383_s21 }
  0x14   :  { %223 = vmatpush.bf16.msra.mxu0 %v1577_v0  ;;  %v1575_v2 = vld [vmem:[#allocation9 + $0x28] sm:$0xff]  ;;  %v1574_v3 = vld [vmem:[#allocation9 + $0x20] sm:$0xff]  ;;  %v1573_v4 = vld [vmem:[#allocation9 + $0x18] sm:$0xff]  ;;  %s1908_s22 = smov 128   ;;  %s1909_s23 = smov 8  }
  0x15   :  { %v1572_v5 = vld [vmem:[#allocation9 + $0x10] sm:$0xff]  ;;  %v1571_v6 = vld [vmem:[#allocation9 + $0x8] sm:$0xff]  ;;  %v1570_v7 = vld [vmem:[#allocation9] sm:$0xff] }
  0x16   :  { %v1562_v8 = vld [vmem:[#allocation6] sm:$0xff]  ;;  %v1563_v9 = vld [vmem:[#allocation6 + $0x8] sm:$0xff]  ;;  %v1564_v10 = vld [vmem:[#allocation6 + $0x10] sm:$0xff] }
  0x17   :  { %v1565_v11 = vld [vmem:[#allocation6 + $0x18] sm:$0xff]  ;;  %v1584_v13 = vld [vmem:[#allocation11 + $0x30] sm:$0xff]  ;;  %v1566_v14 = vld [vmem:[#allocation6 + $0x20] sm:$0xff] }
  0x18   :  { %224 = vmatpush.bf16.msra.mxu0 %v1576_v1  ;;  %v1585_v12 = vld [vmem:[#allocation11 + $0x38] sm:$0xff]  ;;  %v1583_v15 = vld [vmem:[#allocation11 + $0x28] sm:$0xff]  ;;  %v1582_v16 = vld [vmem:[#allocation11 + $0x20] sm:$0xff] }
  0x19   :  { %520 = vmatpush.bf16.xpose.msra.mxu1 %v1585_v12  ;;  %1649 = vmatpush.bf16.xpose.msra.mxu3 %v1585_v12  ;;  %v1567_v17 = vld [vmem:[#allocation6 + $0x28] sm:$0xff]  ;;  %v1581_v18 = vld [vmem:[#allocation11 + $0x18] sm:$0xff]  ;;  %v1568_v19 = vld [vmem:[#allocation6 + $0x30] sm:$0xff] }
  0x1a   :  { %v1580_v20 = vld [vmem:[#allocation11 + $0x10] sm:$0xff]  ;;  %v1579_v21 = vld [vmem:[#allocation11 + $0x8] sm:$0xff]  ;;  %v1569_v22 = vld [vmem:[#allocation6 + $0x38] sm:$0xff] }
  0x1b   :  { %v1578_v23 = vld [vmem:[#allocation11] sm:$0xff] }
  0x1c   :  { %225 = vmatpush.bf16.msra.mxu0 %v1575_v2  ;;  %v1960_v25 = vld [vmem:[%s2379_s2] ss:$0 sm:$0xff] }
  0x20   :  { %226 = vmatpush.bf16.msra.mxu0 %v1574_v3 }
  0x21   :  { %521 = vmatpush.bf16.xpose.msra.mxu1 %v1584_v13  ;;  %1650 = vmatpush.bf16.xpose.msra.mxu3 %v1584_v13 }
  0x24   :  { %227 = vmatpush.bf16.msra.mxu0 %v1573_v4 }
  0x28   :  { %228 = vmatpush.bf16.msra.mxu0 %v1572_v5 }
  0x29   :  { %522 = vmatpush.bf16.xpose.msra.mxu1 %v1583_v15  ;;  %1651 = vmatpush.bf16.xpose.msra.mxu3 %v1583_v15 }
  0x2c   :  { %229 = vmatpush.bf16.msra.mxu0 %v1571_v6 }
  0x30   :  { %230 = vmatpush.bf16.msra.mxu0 %v1570_v7 }
  0x31   :  { %523 = vmatpush.bf16.xpose.msra.mxu1 %v1582_v16  ;;  %1652 = vmatpush.bf16.xpose.msra.mxu3 %v1582_v16 }
  0x33   :  { %231 = vmatmul.bf16.vlgmr.msra.gmra.mxu0 %v1562_v8 }
  0x39   :  { %524 = vmatpush.bf16.xpose.msra.mxu1 %v1581_v18  ;;  %1653 = vmatpush.bf16.xpose.msra.mxu3 %v1581_v18 }
  0x41   :  { %525 = vmatpush.bf16.xpose.msra.mxu1 %v1580_v20  ;;  %1654 = vmatpush.bf16.xpose.msra.mxu3 %v1580_v20 }
  0x43   :  { %236 = vmatmul.bf16.gmra.mxu0 %v1563_v9 }
  0x49   :  { %526 = vmatpush.bf16.xpose.msra.mxu1 %v1579_v21  ;;  %1655 = vmatpush.bf16.xpose.msra.mxu3 %v1579_v21 }
  0x51   :  { %527 = vmatpush.bf16.xpose.msra.mxu1 %v1578_v23  ;;  %1656 = vmatpush.bf16.xpose.msra.mxu3 %v1578_v23 }
  0x53   :  { %241 = vmatmul.bf16.gmra.mxu0 %v1564_v10 }
  0x63   :  { %246 = vmatmul.bf16.gmra.mxu0 %v1565_v11 }
  0x73   :  { %251 = vmatmul.bf16.gmra.mxu0 %v1566_v14 }
  0x83   :  { %256 = vmatmul.bf16.gmra.mxu0 %v1567_v17 }
  0x93   :  { %261 = vmatmul.bf16.gmra.mxu0 %v1568_v19 }
  0xa3   :  { %266 = vmatmul.bf16.gmra.mxu0 %v1569_v22 }
  0xb0   :  { %v232_v24 = vpop.f32.mrf.mxu0 }
  0xb1   :  { %v233_v26 = vadd.f32 %v1960_v25, %v232_v24 }
  0xb3   :  { %v272_v29 = vmul.f32 0.17677669, %v233_v26  ;;  %v569_v26 = vlaneseq }
  0xb8   :  { %v234_v27 = vpop.f32.mrf.mxu0 }
  0xb9   :  { %v235_v28 = vadd.f32 %v1960_v25, %v234_v27  ;;  %v1978_v27 = vand.u32 127, %v569_v26 }
  0xbb   :  { %v273_v30 = vmul.f32 0.17677669, %v235_v28  ;;  %vm573_vm0 = vcmp.ge.s32.totalorder %v1978_v27, 16 }
  0xbd   :  { %v1605_v31 = vpack.c.bf16 %v273_v30, %v272_v29 }
  0xbf   :  { %1606 = vst [vmem:[#allocation2 + $0x30] sm:$0xff] %v1605_v31  }
  0xc0   :  { %v237_v32 = vpop.f32.mrf.mxu0 }
  0xc1   :  { %v238_v34 = vadd.f32 %v1960_v25, %v237_v32 }
  0xc3   :  { %v274_v37 = vmul.f32 0.17677669, %v238_v34 }
  0xc6   :  { %v1594_v33 = vld [vmem:[#allocation2 + $0x30] sm:$0xff] }
  0xc7   :  { %528 = vmatmul.bf16.vlgmr.msra.gmra.mxu1 %v1594_v33 }
  0xc8   :  { %v239_v35 = vpop.f32.mrf.mxu0 }
  0xc9   :  { %v240_v36 = vadd.f32 %v1960_v25, %v239_v35 }
  0xcb   :  { %v275_v38 = vmul.f32 0.17677669, %v240_v36 }
  0xcd   :  { %v1610_v39 = vpack.c.bf16 %v275_v38, %v274_v37 }
  0xcf   :  { %1642 = vst [vmem:[#allocation2] sm:$0xff] %v1610_v39  }
  0xd0   :  { %v242_v40 = vpop.f32.mrf.mxu0 }
  0xd1   :  { %v243_v42 = vadd.f32 %v1960_v25, %v242_v40 }
  0xd3   :  { %v276_v45 = vmul.f32 0.17677669, %v243_v42 }
  0xd6   :  { %v1595_v41 = vld [vmem:[#allocation2] sm:$0xff] }
  0xd7   :  { %533 = vmatmul.bf16.gmra.mxu1 %v1595_v41 }
  0xd8   :  { %v244_v43 = vpop.f32.mrf.mxu0 }
  0xd9   :  { %v245_v44 = vadd.f32 %v1960_v25, %v244_v43 }
  0xdb   :  { %v277_v46 = vmul.f32 0.17677669, %v245_v44 }
  0xdd   :  { %v1615_v47 = vpack.c.bf16 %v277_v46, %v276_v45 }
  0xdf   :  { %1643 = vst [vmem:[#allocation2 + $0x18] sm:$0xff] %v1615_v47   ;;  %v1904_v47 = vmov -inf  }
  0xe0   :  { %v247_v48 = vpop.f32.mrf.mxu0  ;;  %321 = vst.msk [vmem:[#allocation3] sm:$0xff] %vm320_vm1, %v1904_v47 }
  0xe1   :  { %v248_v50 = vadd.f32 %v1960_v25, %v247_v48  ;;  %322 = vst.msk [vmem:[#allocation3 + $0x8] sm:$0xff] %vm320_vm1, %v1904_v47 }
  0xe2   :  { %323 = vst.msk [vmem:[#allocation3 + $0x10] sm:$0xff] %vm320_vm1, %v1904_v47 }
  0xe3   :  { %v278_v53 = vmul.f32 0.17677669, %v248_v50  ;;  %324 = vst.msk [vmem:[#allocation3 + $0x18] sm:$0xff] %vm320_vm1, %v1904_v47 }
  0xe4   :  { %325 = vst.msk [vmem:[#allocation3 + $0x20] sm:$0xff] %vm320_vm1, %v1904_v47 }
  0xe5   :  { %326 = vst.msk [vmem:[#allocation3 + $0x28] sm:$0xff] %vm320_vm1, %v1904_v47 }
  0xe6   :  { %v1596_v49 = vld [vmem:[#allocation2 + $0x18] sm:$0xff]  ;;  %327 = vst.msk [vmem:[#allocation3 + $0x30] sm:$0xff] %vm320_vm1, %v1904_v47 }
  0xe7   :  { %538 = vmatmul.bf16.gmra.mxu1 %v1596_v49  ;;  %328 = vst.msk [vmem:[#allocation3 + $0x38] sm:$0xff] %vm320_vm1, %v1904_v47 }
  0xe8   :  { %v249_v51 = vpop.f32.mrf.mxu0  ;;  %329 = vst.msk [vmem:[#allocation3 + $0x40] sm:$0xff] %vm320_vm1, %v1904_v47 }
  0xe9   :  { %v250_v52 = vadd.f32 %v1960_v25, %v249_v51  ;;  %330 = vst.msk [vmem:[#allocation3 + $0x48] sm:$0xff] %vm320_vm1, %v1904_v47  ;;  %v1905_v51 = vmov 0.0  }
  0xea   :  { %331 = vst.msk [vmem:[#allocation3 + $0x50] sm:$0xff] %vm320_vm1, %v1904_v47 }
  0xeb   :  { %v279_v54 = vmul.f32 0.17677669, %v250_v52  ;;  %332 = vst.msk [vmem:[#allocation3 + $0x58] sm:$0xff] %vm320_vm1, %v1904_v47 }
  0xec   :  { %333 = vst.msk [vmem:[#allocation3 + $0x60] sm:$0xff] %vm320_vm1, %v1904_v47 }
  0xed   :  { %v1620_v55 = vpack.c.bf16 %v279_v54, %v278_v53  ;;  %334 = vst.msk [vmem:[#allocation3 + $0x68] sm:$0xff] %vm320_vm1, %v1904_v47 }
  0xee   :  { %335 = vst.msk [vmem:[#allocation3 + $0x70] sm:$0xff] %vm320_vm1, %v1904_v47 }
  0xef   :  { %1644 = vst [vmem:[#allocation2 + $0x10] sm:$0xff] %v1620_v55   ;;  %v1906_v55 = vmov 0  }
  0xf0   :  { %v252_v56 = vpop.f32.mrf.mxu0  ;;  %336 = vst.msk [vmem:[#allocation3 + $0x78] sm:$0xff] %vm320_vm1, %v1904_v47  ;;  %1669 = vset.pattern.permute.xlu1 %v1906_v55  ;;  %1670 = vset.pattern.permute.xlu2 %v1906_v55 }
  0xf1   :  { %v253_v58 = vadd.f32 %v1960_v25, %v252_v56  ;;  %337 = vst.msk [vmem:[#allocation4] sm:$0xff] %vm320_vm1, %v1905_v51  ;;  %1671 = vset.pattern.permute.xlu0 %v1906_v55 }
  0xf2   :  { %338 = vst.msk [vmem:[#allocation4 + $0x8] sm:$0xff] %vm320_vm1, %v1905_v51 }
  0xf3   :  { %v280_v61 = vmul.f32 0.17677669, %v253_v58  ;;  %339 = vst.msk [vmem:[#allocation4 + $0x10] sm:$0xff] %vm320_vm1, %v1905_v51  ;;  %v592_v58 = vld [vmem:[#allocation3] sm:$0xff] }
  0xf4   :  { %340 = vst.msk [vmem:[#allocation4 + $0x18] sm:$0xff] %vm320_vm1, %v1905_v51 }
  0xf5   :  { %341 = vst.msk [vmem:[#allocation4 + $0x20] sm:$0xff] %vm320_vm1, %v1905_v51 }
  0xf6   :  { %v1597_v57 = vld [vmem:[#allocation2 + $0x10] sm:$0xff]  ;;  %342 = vst.msk [vmem:[#allocation4 + $0x28] sm:$0xff] %vm320_vm1, %v1905_v51 }
  0xf7   :  { %543 = vmatmul.bf16.gmra.mxu1 %v1597_v57  ;;  %343 = vst.msk [vmem:[#allocation4 + $0x30] sm:$0xff] %vm320_vm1, %v1905_v51 }
  0xf8   :  { %v254_v59 = vpop.f32.mrf.mxu0  ;;  %344 = vst.msk [vmem:[#allocation4 + $0x38] sm:$0xff] %vm320_vm1, %v1905_v51 }
  0xf9   :  { %v255_v60 = vadd.f32 %v1960_v25, %v254_v59  ;;  %345 = vst.msk [vmem:[#allocation4 + $0x40] sm:$0xff] %vm320_vm1, %v1905_v51 }
  0xfa   :  { %346 = vst.msk [vmem:[#allocation4 + $0x48] sm:$0xff] %vm320_vm1, %v1905_v51 }
  0xfb   :  { %v281_v62 = vmul.f32 0.17677669, %v255_v60  ;;  %347 = vst.msk [vmem:[#allocation4 + $0x50] sm:$0xff] %vm320_vm1, %v1905_v51 }
  0xfc   :  { %348 = vst.msk [vmem:[#allocation4 + $0x58] sm:$0xff] %vm320_vm1, %v1905_v51 }
  0xfd   :  { %v1625_v63 = vpack.c.bf16 %v281_v62, %v280_v61  ;;  %349 = vst.msk [vmem:[#allocation4 + $0x60] sm:$0xff] %vm320_vm1, %v1905_v51 }
  0xfe   :  { %350 = vst.msk [vmem:[#allocation4 + $0x68] sm:$0xff] %vm320_vm1, %v1905_v51 }
  0xff   :  { %1645 = vst [vmem:[#allocation2 + $0x8] sm:$0xff] %v1625_v63   ;;  %v593_v63 = vld [vmem:[#allocation3 + $0x8] sm:$0xff] }
 0x100   :  { %v257_v0 = vpop.f32.mrf.mxu0  ;;  %351 = vst.msk [vmem:[#allocation4 + $0x70] sm:$0xff] %vm320_vm1, %v1905_v51 }
 0x101   :  { %v258_v2 = vadd.f32 %v1960_v25, %v257_v0  ;;  %352 = vst.msk [vmem:[#allocation4 + $0x78] sm:$0xff] %vm320_vm1, %v1905_v51 }
 0x103   :  { %v282_v5 = vmul.f32 0.17677669, %v258_v2 }
 0x106   :  { %v1598_v1 = vld [vmem:[#allocation2 + $0x8] sm:$0xff] }
 0x107   :  { %548 = vmatmul.bf16.gmra.mxu1 %v1598_v1 }
 0x108   :  { %v259_v3 = vpop.f32.mrf.mxu0 }
 0x109   :  { %v260_v4 = vadd.f32 %v1960_v25, %v259_v3 }
 0x10b   :  { %v283_v6 = vmul.f32 0.17677669, %v260_v4  ;;  %v594_v4 = vld [vmem:[#allocation3 + $0x10] sm:$0xff] }
 0x10d   :  { %v1630_v7 = vpack.c.bf16 %v283_v6, %v282_v5 }
 0x10f   :  { %1646 = vst [vmem:[#allocation2 + $0x20] sm:$0xff] %v1630_v7   ;;  %v595_v7 = vld [vmem:[#allocation3 + $0x18] sm:$0xff] }
 0x110   :  { %v262_v8 = vpop.f32.mrf.mxu0 }
 0x111   :  { %v263_v10 = vadd.f32 %v1960_v25, %v262_v8 }
 0x113   :  { %v284_v13 = vmul.f32 0.17677669, %v263_v10  ;;  %v2097_v10 = vld [vmem:[#allocation3 + $0x20] sm:$0xff] }
 0x116   :  { %v1599_v9 = vld [vmem:[#allocation2 + $0x20] sm:$0xff] }
 0x117   :  { %553 = vmatmul.bf16.vlgmr.msra.gmra.mxu3 %v1599_v9 }
 0x118   :  { %v264_v11 = vpop.f32.mrf.mxu0 }
 0x119   :  { %v265_v12 = vadd.f32 %v1960_v25, %v264_v11 }
 0x11b   :  { %v285_v14 = vmul.f32 0.17677669, %v265_v12 }
 0x11d   :  { %v1635_v15 = vpack.c.bf16 %v285_v14, %v284_v13  ;;  %v597_v14 = vld [vmem:[#allocation3 + $0x28] sm:$0xff] }
 0x11f   :  { %1647 = vst [vmem:[#allocation2 + $0x28] sm:$0xff] %v1635_v15  }
 0x120   :  { %v267_v16 = vpop.f32.mrf.mxu0 }
 0x121   :  { %v268_v17 = vadd.f32 %v1960_v25, %v267_v16 }
 0x123   :  { %v286_v20 = vmul.f32 0.17677669, %v268_v17  ;;  %v598_v17 = vld [vmem:[#allocation3 + $0x30] sm:$0xff] }
 0x126   :  { %v1600_v18 = vld [vmem:[#allocation2 + $0x28] sm:$0xff] }
 0x127   :  { %558 = vmatmul.bf16.gmra.mxu3 %v1600_v18 }
 0x128   :  { %v269_v19 = vpop.f32.mrf.mxu0 }
 0x129   :  { %v270_v21 = vadd.f32 %v1960_v25, %v269_v19 }
 0x12b   :  { %v287_v22 = vmul.f32 0.17677669, %v270_v21  ;;  %v2109_v21 = vld [vmem:[#allocation3 + $0x38] sm:$0xff] }
 0x12d   :  { %v1640_v23 = vpack.c.bf16 %v287_v22, %v286_v20 }
 0x12f   :  { %1648 = vst [vmem:[#allocation2 + $0x38] sm:$0xff] %v1640_v23  }
 0x136   :  { %v1601_v24 = vld [vmem:[#allocation2 + $0x38] sm:$0xff] }
 0x137   :  { %563 = vmatmul.bf16.gmra.mxu3 %v1601_v24 }
 0x144   :  { %v529_v28 = vpop.f32.mrf.mxu1 }
 0x145   :  { %v1983_v29 = vsel %vm573_vm0, -inf, %v529_v28  ;;  %v2119_v28 = vld [vmem:[#allocation3 + $0x40] sm:$0xff] }
 0x146   :  { %608 = vmax.xlane.f32.xlu0 %v1983_v29 }
 0x14c   :  { %v531_v30 = vpop.f32.mrf.mxu1 }
 0x14d   :  { %v1988_v25 = vsel %vm573_vm0, -inf, %v531_v30 }
 0x14e   :  { %610 = vmax.xlane.f32.xlu0 %v1988_v25 }
 0x154   :  { %v534_v31 = vpop.f32.mrf.mxu1 }
 0x155   :  { %v1993_v32 = vsel %vm573_vm0, -inf, %v534_v31 }
 0x156   :  { %612 = vmax.xlane.f32.xlu1 %v1993_v32 }
 0x15c   :  { %v536_v33 = vpop.f32.mrf.mxu1 }
 0x15d   :  { %v1998_v34 = vsel %vm573_vm0, -inf, %v536_v33 }
 0x15e   :  { %614 = vmax.xlane.f32.xlu1 %v1998_v34 }
 0x164   :  { %v539_v35 = vpop.f32.mrf.mxu1 }
 0x165   :  { %v2003_v36 = vsel %vm573_vm0, -inf, %v539_v35 }
 0x166   :  { %616 = vmax.xlane.f32.xlu2 %v2003_v36 }
 0x16c   :  { %v541_v37 = vpop.f32.mrf.mxu1 }
 0x16d   :  { %v2008_v38 = vsel %vm573_vm0, -inf, %v541_v37 }
 0x16e   :  { %618 = vmax.xlane.f32.xlu2 %v2008_v38 }
 0x174   :  { %v544_v39 = vpop.f32.mrf.mxu1 }
 0x175   :  { %v2013_v40 = vsel %vm573_vm0, -inf, %v544_v39 }
 0x176   :  { %620 = vmax.xlane.f32.xlu0 %v2013_v40 }
 0x17c   :  { %v546_v41 = vpop.f32.mrf.mxu1 }
 0x17d   :  { %v2018_v42 = vsel %vm573_vm0, -inf, %v546_v41  ;;  %v2130_v41 = vld [vmem:[#allocation3 + $0x48] sm:$0xff] }
 0x17e   :  { %622 = vmax.xlane.f32.xlu1 %v2018_v42 }
 0x184   :  { %v549_v43 = vpop.f32.mrf.mxu1 }
 0x185   :  { %v2023_v44 = vsel %vm573_vm0, -inf, %v549_v43 }
 0x186   :  { %624 = vmax.xlane.f32.xlu2 %v2023_v44 }
 0x18c   :  { %v551_v45 = vpop.f32.mrf.mxu1 }
 0x18d   :  { %v2028_v46 = vsel %vm573_vm0, -inf, %v551_v45 }
 0x18e   :  { %626 = vmax.xlane.f32.xlu0 %v2028_v46 }
 0x19a   :  { %v554_v48 = vpop.f32.mrf.mxu3 }
 0x19b   :  { %v2042_v49 = vsel %vm573_vm0, -inf, %v554_v48 }
 0x19c   :  { %628 = vmax.xlane.f32.xlu1 %v2042_v49 }
 0x1a2   :  { %v556_v50 = vpop.f32.mrf.mxu3 }
 0x1a3   :  { %v2055_v52 = vsel %vm573_vm0, -inf, %v556_v50 }
 0x1a4   :  { %630 = vmax.xlane.f32.xlu2 %v2055_v52 }
 0x1aa   :  { %v559_v53 = vpop.f32.mrf.mxu3 }
 0x1ab   :  { %v2068_v54 = vsel %vm573_vm0, -inf, %v559_v53 }
 0x1ac   :  { %632 = vmax.xlane.f32.xlu0 %v2068_v54 }
 0x1b2   :  { %v561_v56 = vpop.f32.mrf.mxu3 }
 0x1b3   :  { %v2080_v57 = vsel %vm573_vm0, -inf, %v561_v56  ;;  %v2147_v56 = vld [vmem:[#allocation3 + $0x50] sm:$0xff] }
 0x1b4   :  { %634 = vmax.xlane.f32.xlu1 %v2080_v57 }
 0x1b9   :  { %v609_v59 = vpop.xlane.xlu0 %608 }
 0x1ba   :  { %v640_v60 = vmax.f32 %v592_v58, %v609_v59  ;;  %v564_v61 = vpop.f32.mrf.mxu3 }
 0x1bb   :  { %v2085_v62 = vsel %vm573_vm0, -inf, %v564_v61 }
 0x1bc   :  { %1198 = vst.msk [vmem:[#allocation3] sm:$0xff] %vm320_vm1, %v640_v60  ;;  %636 = vmax.xlane.f32.xlu2 %v2085_v62  ;;  %v656_v27 = vsub.f32 %v592_v58, %v640_v60  ;;  %v1593_v58 = vld [vmem:[#allocation12 + $0x38] sm:$0xff] }
 0x1bd   :  { %1005 = vmatpush.bf16.msra.mxu2 %v1593_v58 }
 0x1be   :  { %v672_v30 = vmul.f32 1.442695, %v656_v27 }
 0x1c1   :  { %v611_v0 = vpop.xlane.xlu0 %610 }
 0x1c2   :  { %v641_v1 = vmax.f32 %v593_v63, %v611_v0  ;;  %v566_v2 = vpop.f32.mrf.mxu3 }
 0x1c3   :  { %v2091_v3 = vsel %vm573_vm0, -inf, %v566_v2  ;;  %v1591_v2 = vld [vmem:[#allocation12 + $0x28] sm:$0xff] }
 0x1c4   :  { %1199 = vst.msk [vmem:[#allocation3 + $0x8] sm:$0xff] %vm320_vm1, %v641_v1  ;;  %638 = vmax.xlane.f32.xlu0 %v2091_v3  ;;  %v657_v20 = vsub.f32 %v593_v63, %v641_v1  ;;  %v1592_v63 = vld [vmem:[#allocation12 + $0x30] sm:$0xff] }
 0x1c5   :  { %1006 = vmatpush.bf16.msra.mxu2 %v1592_v63 }
 0x1c6   :  { %v674_v22 = vmul.f32 1.442695, %v657_v20  ;;  %v605_v20 = vld [vmem:[#allocation3 + $0x68] sm:$0xff] }
 0x1c8   :  { %1674 = vpow2.f32 %v674_v22 }
 0x1c9   :  { %v613_v5 = vpop.xlane.xlu1 %612  ;;  %1676 = vpow2.f32 %v672_v30  ;;  %1007 = vmatpush.bf16.msra.mxu2 %v1591_v2  ;;  %v1586_v30 = vld [vmem:[#allocation12] sm:$0xff] }
 0x1ca   :  { %v642_v6 = vmax.f32 %v594_v4, %v613_v5 }
 0x1cc   :  { %1200 = vst.msk [vmem:[#allocation3 + $0x10] sm:$0xff] %vm320_vm1, %v642_v6  ;;  %v658_v37 = vsub.f32 %v594_v4, %v642_v6 }
 0x1cd   :  { %706 = vperm.xlu1 %1669, %v640_v60  }
 0x1ce   :  { %v2124_v35 = vpop.eup %1674  ;;  %v676_v43 = vmul.f32 1.442695, %v658_v37 }
 0x1cf   :  { %v2135_v50 = vpop.eup %1676 }
 0x1d0   :  { %1678 = vpow2.f32 %v676_v43 }
 0x1d1   :  { %v615_v8 = vpop.xlane.xlu1 %614 }
 0x1d2   :  { %v643_v9 = vmax.f32 %v595_v7, %v615_v8  ;;  %v1590_v8 = vld [vmem:[#allocation12 + $0x20] sm:$0xff] }
 0x1d3   :  { %1008 = vmatpush.bf16.msra.mxu2 %v1590_v8 }
 0x1d4   :  { %1201 = vst.msk [vmem:[#allocation3 + $0x18] sm:$0xff] %vm320_vm1, %v643_v9  ;;  %711 = vperm.xlu2 %1670, %v641_v1   ;;  %v659_v39 = vsub.f32 %v595_v7, %v643_v9  ;;  %v603_v1 = vld [vmem:[#allocation3 + $0x58] sm:$0xff] }
 0x1d6   :  { %v678_v45 = vmul.f32 1.442695, %v659_v39  ;;  %v2141_v51 = vpop.eup %1678 }
 0x1d8   :  { %716 = vperm.xlu0 %1671, %v642_v6   ;;  %1680 = vpow2.f32 %v678_v45 }
 0x1d9   :  { %v617_v11 = vpop.xlane.xlu2 %616 }
 0x1da   :  { %v2100_v12 = vmax.f32 %v2097_v10, %v617_v11 }
 0x1dc   :  { %v660_v13 = vsub.f32 %v2097_v10, %v2100_v12  ;;  %1202 = vst.msk [vmem:[#allocation3 + $0x20] sm:$0xff] %vm320_vm1, %v2100_v12  ;;  %726 = vperm.xlu1 %1669, %v2100_v12   ;;  %721 = vperm.xlu2 %1670, %v643_v9   ;;  %v604_v9 = vld [vmem:[#allocation3 + $0x60] sm:$0xff] }
 0x1de   :  { %v2143_v53 = vpop.eup %1680  ;;  %v680_v11 = vmul.f32 1.442695, %v660_v13  ;;  %v1587_v13 = vld [vmem:[#allocation12 + $0x8] sm:$0xff] }
 0x1e1   :  { %v619_v15 = vpop.xlane.xlu2 %618 }
 0x1e2   :  { %v645_v16 = vmax.f32 %v597_v14, %v619_v15  ;;  %v1589_v15 = vld [vmem:[#allocation12 + $0x18] sm:$0xff] }
 0x1e3   :  { %1009 = vmatpush.bf16.msra.mxu2 %v1589_v15 }
 0x1e4   :  { %1203 = vst.msk [vmem:[#allocation3 + $0x28] sm:$0xff] %vm320_vm1, %v645_v16  ;;  %731 = vperm.xlu2 %1670, %v645_v16   ;;  %v661_v55 = vsub.f32 %v597_v14, %v645_v16 }
 0x1e6   :  { %v682_v59 = vmul.f32 1.442695, %v661_v55 }
 0x1e8   :  { %1682 = vpow2.f32 %v682_v59 }
 0x1e9   :  { %v621_v18 = vpop.xlane.xlu0 %620 }
 0x1ea   :  { %v646_v19 = vmax.f32 %v598_v17, %v621_v18 }
 0x1ec   :  { %1204 = vst.msk [vmem:[#allocation3 + $0x30] sm:$0xff] %vm320_vm1, %v646_v19  ;;  %736 = vperm.xlu1 %1669, %v646_v19   ;;  %v662_v0 = vsub.f32 %v598_v17, %v646_v19  ;;  %v1588_v19 = vld [vmem:[#allocation12 + $0x10] sm:$0xff] }
 0x1ed   :  { %1010 = vmatpush.bf16.msra.mxu2 %v1588_v19 }
 0x1ee   :  { %v684_v4 = vmul.f32 1.442695, %v662_v0  ;;  %v2155_v7 = vpop.eup %1682 }
 0x1f0   :  { %1684 = vpow2.f32 %v684_v4 }
 0x1f1   :  { %v623_v23 = vpop.xlane.xlu1 %622  ;;  %1686 = vpow2.f32 %v680_v11  ;;  %1011 = vmatpush.bf16.msra.mxu2 %v1587_v13 }
 0x1f2   :  { %v2112_v24 = vmax.f32 %v2109_v21, %v623_v23 }
 0x1f4   :  { %v663_v26 = vsub.f32 %v2109_v21, %v2112_v24  ;;  %1205 = vst.msk [vmem:[#allocation3 + $0x38] sm:$0xff] %vm320_vm1, %v2112_v24  ;;  %741 = vperm.xlu2 %1670, %v2112_v24  }
 0x1f5   :  { %1012 = vmatpush.bf16.msra.mxu2 %v1586_v30 }
 0x1f6   :  { %v2162_v17 = vpop.eup %1684 }
 0x1f7   :  { %v2168_v23 = vpop.eup %1686 }
 0x1f9   :  { %v625_v31 = vpop.xlane.xlu2 %624 }
 0x1fa   :  { %v2122_v33 = vmax.f32 %v2119_v28, %v625_v31  ;;  %v2174_v31 = vld [vmem:[#allocation3 + $0x70] sm:$0xff] }
 0x1fc   :  { %1206 = vst.msk [vmem:[#allocation3 + $0x40] sm:$0xff] %vm320_vm1, %v2122_v33  ;;  %1077 = vperm.xlu2 %1670, %v2124_v35   ;;  %746 = vperm.xlu1 %1669, %v2122_v33   ;;  %v664_v18 = vsub.f32 %v2119_v28, %v2122_v33 }
 0x1fe   :  { %v688_v10 = vmul.f32 1.442695, %v664_v18 }
 0x200   :  { %1688 = vpow2.f32 %v688_v10 }
 0x201   :  { %v627_v47 = vpop.xlane.xlu0 %626 }
 0x202   :  { %v2133_v48 = vmax.f32 %v2130_v41, %v627_v47  ;;  %v2185_v47 = vld [vmem:[#allocation3 + $0x78] sm:$0xff] }
 0x204   :  { %1207 = vst.msk [vmem:[#allocation3 + $0x48] sm:$0xff] %vm320_vm1, %v2133_v48  ;;  %1072 = vperm.xlu1 %1669, %v2135_v50   ;;  %751 = vperm.xlu0 %1671, %v2133_v48   ;;  %v665_v27 = vsub.f32 %v2130_v41, %v2133_v48 }
 0x206   :  { %v690_v33 = vmul.f32 1.442695, %v665_v27  ;;  %v2179_v45 = vpop.eup %1688 }
 0x208   :  { %1690 = vpow2.f32 %v690_v33 }
 0x20c   :  { %1087 = vperm.xlu1 %1669, %v2143_v53   ;;  %1082 = vperm.xlu0 %1671, %v2141_v51  }
 0x20e   :  { %v2187_v59 = vpop.eup %1690 }
 0x20f   :  { %v629_v60 = vpop.xlane.xlu1 %628 }
 0x210   :  { %v2150_v61 = vmax.f32 %v2147_v56, %v629_v60  ;;  %v686_v60 = vmul.f32 1.442695, %v663_v26 }
 0x212   :  { %1208 = vst.msk [vmem:[#allocation3 + $0x50] sm:$0xff] %vm320_vm1, %v2150_v61  ;;  %756 = vperm.xlu2 %1670, %v2150_v61   ;;  %v666_v21 = vsub.f32 %v2147_v56, %v2150_v61 }
 0x214   :  { %v692_v26 = vmul.f32 1.442695, %v666_v21 }
 0x217   :  { %v631_v5 = vpop.xlane.xlu2 %630 }
 0x218   :  { %v651_v6 = vmax.f32 %v603_v1, %v631_v5 }
 0x21a   :  { %1209 = vst.msk [vmem:[#allocation3 + $0x58] sm:$0xff] %vm320_vm1, %v651_v6  ;;  %1097 = vperm.xlu2 %1670, %v2155_v7   ;;  %761 = vperm.xlu1 %1669, %v651_v6   ;;  %v667_v28 = vsub.f32 %v603_v1, %v651_v6 }
 0x21c   :  { %v694_v37 = vmul.f32 1.442695, %v667_v28 }
 0x21e   :  { %1692 = vpow2.f32 %v694_v37 }
 0x21f   :  { %v633_v14 = vpop.xlane.xlu0 %632 }
 0x220   :  { %v652_v16 = vmax.f32 %v604_v9, %v633_v14 }
 0x222   :  { %1210 = vst.msk [vmem:[#allocation3 + $0x60] sm:$0xff] %vm320_vm1, %v652_v16  ;;  %1102 = vperm.xlu1 %1669, %v2162_v17   ;;  %766 = vperm.xlu0 %1671, %v652_v16   ;;  %v668_v41 = vsub.f32 %v604_v9, %v652_v16  ;;  %v2217_v9 = vld [vmem:[%s2382_s5] ss:$0 sm:$0xff]  ;;  %s1907_s5 = smov [#allocation14]  }
 0x223   :  { %s1381_s18 = sshll.u32 %s1907_s5, 4  ;;  %s1382_s18 = int_to_ptr.vmem [resolvable:$true] %s1381_s18 }
 0x224   :  { %v696_v48 = vmul.f32 1.442695, %v668_v41  ;;  %v2195_v0 = vpop.eup %1692 }
 0x226   :  { %1694 = vpow2.f32 %v696_v48 }
 0x227   :  { %v635_v12 = vpop.xlane.xlu1 %634  ;;  %1696 = vpow2.f32 %v686_v60 }
 0x228   :  { %v653_v22 = vmax.f32 %v605_v20, %v635_v12 }
 0x22a   :  { %1211 = vst.msk [vmem:[#allocation3 + $0x68] sm:$0xff] %vm320_vm1, %v653_v22  ;;  %771 = vperm.xlu2 %1670, %v653_v22   ;;  %1092 = vperm.xlu0 %1671, %v2168_v23   ;;  %v669_v56 = vsub.f32 %v605_v20, %v653_v22 }
 0x22c   :  { %v2208_v5 = vpop.eup %1694  ;;  %v698_v11 = vmul.f32 1.442695, %v669_v56 }
 0x22d   :  { %v2210_v6 = vpop.eup %1696 }
 0x22f   :  { %v637_v39 = vpop.xlane.xlu2 %636 }
 0x230   :  { %v2177_v43 = vmax.f32 %v2174_v31, %v637_v39 }
 0x232   :  { %1212 = vst.msk [vmem:[#allocation3 + $0x70] sm:$0xff] %vm320_vm1, %v2177_v43  ;;  %1112 = vperm.xlu2 %1670, %v2179_v45   ;;  %776 = vperm.xlu1 %1669, %v2177_v43  }
 0x237   :  { %v712_v55 = vpop.permute.xlu2 %711  ;;  %v639_v58 = vpop.xlane.xlu0 %638 }
 0x238   :  { %v2193_v63 = vmax.f32 %v2185_v47, %v639_v58  ;;  %v785_v1 = vsub.f32 %v1988_v25, %v712_v55 }
 0x23a   :  { %v671_v2 = vsub.f32 %v2185_v47, %v2193_v63  ;;  %1213 = vst.msk [vmem:[#allocation3 + $0x78] sm:$0xff] %vm320_vm1, %v2193_v63  ;;  %1127 = vperm.xlu2 %1670, %v2195_v0   ;;  %1117 = vperm.xlu1 %1669, %v2187_v59   ;;  %v802_v24 = vmul.f32 1.442695, %v785_v1 }
 0x23b   :  { %781 = vperm.xlu0 %1671, %v2193_v63  }
 0x23c   :  { %1698 = vpow2.f32 %v802_v24 }
 0x23d   :  { %1700 = vpow2.f32 %v692_v26 }
 0x23f   :  { %v707_v25 = vpop.permute.xlu1 %706  ;;  %v722_v61 = vpop.permute.xlu2 %721 }
 0x240   :  { %v784_v4 = vsub.f32 %v1983_v29, %v707_v25  ;;  %v787_v16 = vsub.f32 %v1998_v34, %v722_v61 }
 0x242   :  { %v800_v8 = vmul.f32 1.442695, %v784_v4  ;;  %1132 = vperm.xlu1 %1669, %v2208_v5   ;;  %v1699_v29 = vpop.eup %1698  ;;  %v806_v22 = vmul.f32 1.442695, %v787_v16  ;;  %v670_v4 = vsub.f32 %v2174_v31, %v2177_v43  ;;  %v702_v31 = vmul.f32 1.442695, %v671_v2 }
 0x243   :  { %1107 = vperm.xlu0 %1671, %v2210_v6   ;;  %v2219_v14 = vpop.eup %1700  ;;  %v934_v10 = vmul.f32 %v1699_v29, %v2217_v9 }
 0x244   :  { %1702 = vpow2.f32 %v800_v8 }
 0x245   :  { %1704 = vpow2.f32 %v698_v11  ;;  %v700_v11 = vmul.f32 1.442695, %v670_v4 }
 0x247   :  { %v732_v30 = vpop.permute.xlu2 %731 }
 0x248   :  { %v789_v39 = vsub.f32 %v2008_v38, %v732_v30 }
 0x24a   :  { %v1703_v15 = vpop.eup %1702  ;;  %v717_v18 = vpop.permute.xlu0 %716  ;;  %v810_v58 = vmul.f32 1.442695, %v789_v39 }
 0x24b   :  { %1122 = vperm.xlu0 %1671, %v2219_v14   ;;  %v786_v19 = vsub.f32 %v1993_v32, %v717_v18  ;;  %v933_v20 = vmul.f32 %v1703_v15, %v2217_v9  ;;  %v2226_v27 = vpop.eup %1704 }
 0x24d   :  { %v804_v12 = vmul.f32 1.442695, %v786_v19  ;;  %v949_v13 = vpack.c.bf16 %v934_v10, %v933_v20 }
 0x24e   :  { %v727_v34 = vpop.permute.xlu1 %726 }
 0x24f   :  { %1013 = vmatmul.bf16.vlgmr.msra.gmra.mxu2 %v949_v13  ;;  %1706 = vpow2.f32 %v804_v12  ;;  %v788_v32 = vsub.f32 %v2003_v36, %v727_v34  ;;  %v742_v21 = vpop.permute.xlu2 %741 }
 0x250   :  { %1708 = vpow2.f32 %v806_v22  ;;  %v791_v26 = vsub.f32 %v2018_v42, %v742_v21 }
 0x251   :  { %v808_v48 = vmul.f32 1.442695, %v788_v32 }
 0x252   :  { %v814_v61 = vmul.f32 1.442695, %v791_v26 }
 0x253   :  { %1137 = vperm.xlu0 %1671, %v2226_v27   ;;  %1710 = vpow2.f32 %v808_v48 }
 0x254   :  { %1712 = vpow2.f32 %v810_v58 }
 0x255   :  { %v1707_v28 = vpop.eup %1706 }
 0x256   :  { %v2229_v33 = vpop.eup %1708  ;;  %v935_v37 = vmul.f32 %v1707_v28, %v2217_v9 }
 0x257   :  { %v936_v41 = vmul.f32 %v2229_v33, %v2217_v9  ;;  %v2263_v13 = vpop.permute.xlu2 %1077 }
 0x259   :  { %v950_v55 = vpack.c.bf16 %v936_v41, %v935_v37  ;;  %v2236_v1 = vpop.eup %1710 }
 0x25a   :  { %v2238_v24 = vpop.eup %1712  ;;  %v937_v38 = vmul.f32 %v2236_v1, %v2217_v9 }
 0x25b   :  { %v938_v25 = vmul.f32 %v2238_v24, %v2217_v9 }
 0x25d   :  { %v951_v56 = vpack.c.bf16 %v938_v25, %v937_v38 }
 0x25e   :  { %v737_v60 = vpop.permute.xlu1 %736 }
 0x25f   :  { %1018 = vmatmul.bf16.gmra.mxu2 %v950_v55  ;;  %v790_v36 = vsub.f32 %v2013_v40, %v737_v60 }
 0x261   :  { %v812_v8 = vmul.f32 1.442695, %v790_v36 }
 0x263   :  { %864 = vadd.xlane.f32.xlu2 %v1703_v15  ;;  %1714 = vpow2.f32 %v812_v8 }
 0x264   :  { %1716 = vpow2.f32 %v814_v61 }
 0x265   :  { %1718 = vpow2.f32 %v700_v11 }
 0x266   :  { %1720 = vpow2.f32 %v702_v31 }
 0x269   :  { %v1715_v40 = vpop.eup %1714 }
 0x26a   :  { %v2248_v18 = vpop.eup %1716  ;;  %v939_v19 = vmul.f32 %v1715_v40, %v2217_v9 }
 0x26b   :  { %v2252_v20 = vpop.eup %1718  ;;  %v940_v10 = vmul.f32 %v2248_v18, %v2217_v9 }
 0x26c   :  { %866 = vadd.xlane.f32.xlu1 %v1699_v29  ;;  %v2265_v47 = vpop.eup %1720  ;;  %v757_v63 = vpop.permute.xlu2 %756 }
 0x26e   :  { %v747_v15 = vpop.permute.xlu1 %746 }
 0x26f   :  { %1023 = vmatmul.bf16.gmra.mxu2 %v951_v56  ;;  %v792_v43 = vsub.f32 %v2023_v44, %v747_v15 }
 0x271   :  { %v816_v22 = vmul.f32 1.442695, %v792_v43 }
 0x274   :  { %v2276_v58 = vpop.permute.xlu2 %1097 }
 0x276   :  { %v752_v16 = vpop.permute.xlu0 %751  ;;  %v2258_v29 = vpop.permute.xlu1 %1072 }
 0x277   :  { %v793_v42 = vsub.f32 %v2028_v46, %v752_v16  ;;  %v952_v46 = vpack.c.bf16 %v940_v10, %v939_v19 }
 0x279   :  { %v818_v12 = vmul.f32 1.442695, %v793_v42 }
 0x27b   :  { %1142 = vperm.xlu2 %1670, %v2252_v20   ;;  %1722 = vpow2.f32 %v818_v12 }
 0x27c   :  { %1724 = vpow2.f32 %v816_v22 }
 0x27d   :  { %868 = vadd.xlane.f32.xlu0 %v1707_v28  ;;  %v794_v28 = vsub.f32 %v2042_v49, %v757_v63 }
 0x27e   :  { %v2267_v44 = vpop.permute.xlu1 %1087  ;;  %v2273_v39 = vpop.permute.xlu0 %1082 }
 0x27f   :  { %1028 = vmatmul.bf16.gmra.mxu2 %v952_v46  ;;  %v820_v55 = vmul.f32 1.442695, %v794_v28 }
 0x281   :  { %v1723_v2 = vpop.eup %1722 }
 0x282   :  { %v1725_v34 = vpop.eup %1724  ;;  %v942_v30 = vmul.f32 %v1723_v2, %v2217_v9 }
 0x283   :  { %v941_v32 = vmul.f32 %v1725_v34, %v2217_v9 }
 0x284   :  { %v772_v38 = vpop.permute.xlu2 %771 }
 0x285   :  { %876 = vadd.xlane.f32.xlu0 %v1715_v40  ;;  %1147 = vperm.xlu1 %1669, %v2265_v47   ;;  %v953_v48 = vpack.c.bf16 %v942_v30, %v941_v32 }
 0x28c   :  { %v762_v37 = vpop.permute.xlu1 %761 }
 0x28d   :  { %v795_v41 = vsub.f32 %v2055_v52, %v762_v37  ;;  %882 = vadd.xlane.f32.xlu0 %v1723_v2  ;;  %v797_v52 = vsub.f32 %v2080_v57, %v772_v38 }
 0x28f   :  { %v822_v60 = vmul.f32 1.442695, %v795_v41  ;;  %1033 = vmatmul.bf16.gmra.mxu2 %v953_v48  ;;  %v826_v61 = vmul.f32 1.442695, %v797_v52  ;;  %v833_v48 = vld [vmem:[#allocation4 + $0x8] sm:$0xff] }
 0x291   :  { %1726 = vpow2.f32 %v822_v60  ;;  %v849_v60 = vmul.f32 %v2124_v35, %v833_v48  ;;  %v834_v35 = vld [vmem:[#allocation4 + $0x10] sm:$0xff]  ;;  %v836_v48 = vld [vmem:[#allocation4 + $0x20] sm:$0xff] }
 0x292   :  { %1728 = vpow2.f32 %v820_v55 }
 0x294   :  { %v767_v21 = vpop.permute.xlu0 %766  ;;  %v2282_v11 = vpop.permute.xlu1 %1102 }
 0x295   :  { %v796_v36 = vsub.f32 %v2068_v54, %v767_v21 }
 0x297   :  { %v1727_v49 = vpop.eup %1726  ;;  %v824_v25 = vmul.f32 1.442695, %v796_v36 }
 0x298   :  { %v1729_v26 = vpop.eup %1728  ;;  %v944_v4 = vmul.f32 %v1727_v49, %v2217_v9 }
 0x299   :  { %1730 = vpow2.f32 %v824_v25  ;;  %v943_v8 = vmul.f32 %v1729_v26, %v2217_v9  ;;  %v1153_v25 = vmul.f32 0.0, %v2267_v44 }
 0x29a   :  { %1732 = vpow2.f32 %v826_v61 }
 0x29b   :  { %v954_v56 = vpack.c.bf16 %v944_v4, %v943_v8 }
 0x29c   :  { %v2285_v54 = vpop.permute.xlu0 %1092 }
 0x29f   :  { %1038 = vmatmul.bf16.gmra.mxu2 %v954_v56  ;;  %v1731_v15 = vpop.eup %1730  ;;  %v850_v56 = vmul.f32 %v2141_v51, %v834_v35 }
 0x2a0   :  { %888 = vadd.xlane.f32.xlu0 %v1731_v15  ;;  %v1733_v16 = vpop.eup %1732  ;;  %v945_v57 = vmul.f32 %v1731_v15, %v2217_v9 }
 0x2a1   :  { %v946_v19 = vmul.f32 %v1733_v16, %v2217_v9 }
 0x2a3   :  { %v955_v10 = vpack.c.bf16 %v946_v19, %v945_v57 }
 0x2a4   :  { %870 = vadd.xlane.f32.xlu2 %v2229_v33  ;;  %v777_v40 = vpop.permute.xlu1 %776 }
 0x2a5   :  { %v798_v42 = vsub.f32 %v2085_v62, %v777_v40 }
 0x2a7   :  { %v828_v31 = vmul.f32 1.442695, %v798_v42 }
 0x2a9   :  { %1734 = vpow2.f32 %v828_v31  ;;  %v841_v31 = vld [vmem:[#allocation4 + $0x48] sm:$0xff] }
 0x2ac   :  { %874 = vadd.xlane.f32.xlu2 %v2238_v24 }
 0x2ad   :  { %v782_v43 = vpop.permute.xlu0 %781 }
 0x2ae   :  { %v799_v12 = vsub.f32 %v2091_v3, %v782_v43  ;;  %v2296_v3 = vpop.permute.xlu2 %1112  ;;  %v857_v43 = vmul.f32 %v2187_v59, %v841_v31 }
 0x2af   :  { %872 = vadd.xlane.f32.xlu1 %v2236_v1  ;;  %1043 = vmatmul.bf16.gmra.mxu2 %v955_v10  ;;  %v1735_v46 = vpop.eup %1734  ;;  %v2298_v1 = vpop.permute.xlu1 %1117 }
 0x2b0   :  { %v830_v33 = vmul.f32 1.442695, %v799_v12  ;;  %v947_v24 = vmul.f32 %v1735_v46, %v2217_v9 }
 0x2b2   :  { %1736 = vpow2.f32 %v830_v33 }
 0x2b4   :  { %880 = vadd.xlane.f32.xlu2 %v1725_v34 }
 0x2b5   :  { %v2304_v30 = vpop.permute.xlu0 %1107 }
 0x2b6   :  { %v2300_v2 = vpop.permute.xlu2 %1127 }
 0x2b7   :  { %878 = vadd.xlane.f32.xlu1 %v2248_v18  ;;  %v832_v18 = vld [vmem:[#allocation4] sm:$0xff]  ;;  %v2307_v32 = vpop.permute.xlu1 %1132 }
 0x2b8   :  { %v1737_v62 = vpop.eup %1736  ;;  %v848_v28 = vmul.f32 %v2135_v50, %v832_v18 }
 0x2b9   :  { %894 = vadd.xlane.f32.xlu0 %v1737_v62  ;;  %v948_v22 = vmul.f32 %v1737_v62, %v2217_v9  ;;  %v835_v62 = vld [vmem:[#allocation4 + $0x18] sm:$0xff] }
 0x2bb   :  { %v956_v63 = vpack.c.bf16 %v948_v22, %v947_v24 }
 0x2bc   :  { %886 = vadd.xlane.f32.xlu2 %v1727_v49 }
 0x2bd   :  { %v2312_v55 = vpop.permute.xlu0 %1122 }
 0x2bf   :  { %884 = vadd.xlane.f32.xlu1 %v1729_v26  ;;  %1048 = vmatmul.bf16.gmra.mxu2 %v956_v63  ;;  %v851_v63 = vmul.f32 %v2143_v53, %v835_v62 }
 0x2c4   :  { %892 = vadd.xlane.f32.xlu2 %v1735_v46  ;;  %v844_v46 = vld [vmem:[#allocation4 + $0x60] sm:$0xff] }
 0x2c5   :  { %v2318_v26 = vpop.permute.xlu0 %1137 }
 0x2c7   :  { %890 = vadd.xlane.f32.xlu1 %v1733_v16  ;;  %v838_v16 = vld [vmem:[#allocation4 + $0x30] sm:$0xff] }
 0x2c8   :  { %v854_v42 = vmul.f32 %v2162_v17, %v838_v16  ;;  %v860_v17 = vmul.f32 %v2208_v5, %v844_v46  ;;  %v852_v5 = vmul.f32 %v2168_v23, %v836_v48 }
 0x2d2   :  { %v2302_v34 = vpop.f32.mrf.mxu2 }
 0x2d6   :  { %v865_v9 = vpop.xlane.xlu2 %864 }
 0x2d7   :  { %v896_v37 = vadd.f32 %v865_v9, %v848_v28  ;;  %v837_v9 = vld [vmem:[#allocation4 + $0x28] sm:$0xff] }
 0x2d9   :  { %913 = vst.msk [vmem:[#allocation4] sm:$0xff] %vm320_vm1, %v896_v37  ;;  %v853_v37 = vmul.f32 %v2155_v7, %v837_v9 }
 0x2da   :  { %v2310_v41 = vpop.f32.mrf.mxu2 }
 0x2de   :  { %v2329_v33 = vpop.permute.xlu2 %1142 }
 0x2df   :  { %v867_v21 = vpop.xlane.xlu1 %866 }
 0x2e0   :  { %v897_v36 = vadd.f32 %v867_v21, %v849_v60  ;;  %v1233_v49 = vld [vmem:[#allocation4] sm:$0xff] }
 0x2e1   :  { %1738 = vrcp.f32 %v1233_v49 }
 0x2e2   :  { %914 = vst.msk [vmem:[#allocation4 + $0x8] sm:$0xff] %vm320_vm1, %v897_v36  ;;  %v2316_v50 = vpop.f32.mrf.mxu2 }
 0x2e7   :  { %v1739_v38 = vpop.eup %1738 }
 0x2e8   :  { %1267 = vperm.xlu0 %1671, %v1739_v38   ;;  %v840_v38 = vld [vmem:[#allocation4 + $0x40] sm:$0xff] }
 0x2e9   :  { %v1234_v4 = vld [vmem:[#allocation4 + $0x8] sm:$0xff] }
 0x2ea   :  { %v1021_v52 = vpop.f32.mrf.mxu2  ;;  %1740 = vrcp.f32 %v1234_v4  ;;  %v839_v4 = vld [vmem:[#allocation4 + $0x38] sm:$0xff] }
 0x2eb   :  { %v2321_v8 = vadd.f32 %v1153_v25, %v1021_v52  ;;  %v856_v25 = vmul.f32 %v2179_v45, %v840_v38  ;;  %v855_v23 = vmul.f32 %v2210_v6, %v839_v4 }
 0x2f0   :  { %v1741_v61 = vpop.eup %1740  ;;  %v869_v15 = vpop.xlane.xlu0 %868 }
 0x2f1   :  { %v898_v40 = vadd.f32 %v869_v15, %v850_v56  ;;  %1272 = vperm.xlu2 %1670, %v1741_v61   ;;  %v847_v61 = vld [vmem:[#allocation4 + $0x78] sm:$0xff] }
 0x2f3   :  { %915 = vst.msk [vmem:[#allocation4 + $0x10] sm:$0xff] %vm320_vm1, %v898_v40 }
 0x2f7   :  { %v2334_v28 = vpop.permute.xlu1 %1147 }
 0x2f8   :  { %v877_v57 = vpop.xlane.xlu0 %876 }
 0x2f9   :  { %v902_v19 = vadd.f32 %v877_v57, %v854_v42  ;;  %v863_v42 = vmul.f32 %v2265_v47, %v847_v61  ;;  %v843_v57 = vld [vmem:[#allocation4 + $0x58] sm:$0xff]  ;;  %v1151_v61 = vmul.f32 0.0, %v2263_v13 }
 0x2fa   :  { %v1235_v44 = vld [vmem:[#allocation4 + $0x10] sm:$0xff]  ;;  %v859_v31 = vmul.f32 %v2195_v0, %v843_v57 }
 0x2fb   :  { %919 = vst.msk [vmem:[#allocation4 + $0x30] sm:$0xff] %vm320_vm1, %v902_v19  ;;  %1742 = vrcp.f32 %v1235_v44 }
 0x300   :  { %v883_v10 = vpop.xlane.xlu0 %882 }
 0x301   :  { %v1743_v51 = vpop.eup %1742  ;;  %v905_v12 = vadd.f32 %v883_v10, %v857_v43  ;;  %v842_v43 = vld [vmem:[#allocation4 + $0x50] sm:$0xff] }
 0x302   :  { %1277 = vperm.xlu1 %1669, %v1743_v51   ;;  %v1239_v52 = vld [vmem:[#allocation4 + $0x30] sm:$0xff]  ;;  %v858_v47 = vmul.f32 %v2219_v14, %v842_v43 }
 0x303   :  { %922 = vst.msk [vmem:[#allocation4 + $0x48] sm:$0xff] %vm320_vm1, %v905_v12 }
 0x30a   :  { %v1242_v6 = vld [vmem:[#allocation4 + $0x48] sm:$0xff] }
 0x313   :  { %v889_v22 = vpop.xlane.xlu0 %888 }
 0x314   :  { %v908_v24 = vadd.f32 %v889_v22, %v860_v17 }
 0x316   :  { %925 = vst.msk [vmem:[#allocation4 + $0x60] sm:$0xff] %vm320_vm1, %v908_v24  ;;  %v846_v24 = vld [vmem:[#allocation4 + $0x70] sm:$0xff] }
 0x317   :  { %v871_v18 = vpop.xlane.xlu2 %870 }
 0x318   :  { %v899_v59 = vadd.f32 %v871_v18, %v851_v63  ;;  %v862_v18 = vmul.f32 %v2252_v20, %v846_v24 }
 0x31a   :  { %916 = vst.msk [vmem:[#allocation4 + $0x18] sm:$0xff] %vm320_vm1, %v899_v59  ;;  %v845_v59 = vld [vmem:[#allocation4 + $0x68] sm:$0xff] }
 0x31d   :  { %v1245_v9 = vld [vmem:[#allocation4 + $0x60] sm:$0xff] }
 0x31f   :  { %v875_v60 = vpop.xlane.xlu2 %874 }
 0x320   :  { %v901_v21 = vadd.f32 %v875_v60, %v853_v37 }
 0x321   :  { %v1236_v36 = vld [vmem:[#allocation4 + $0x18] sm:$0xff] }
 0x322   :  { %918 = vst.msk [vmem:[#allocation4 + $0x28] sm:$0xff] %vm320_vm1, %v901_v21  ;;  %v873_v53 = vpop.xlane.xlu1 %872  ;;  %1744 = vrcp.f32 %v1236_v36  ;;  %v861_v21 = vmul.f32 %v2226_v27, %v845_v59 }
 0x323   :  { %v900_v49 = vadd.f32 %v873_v53, %v852_v5  ;;  %1746 = vrcp.f32 %v1239_v52 }
 0x325   :  { %917 = vst.msk [vmem:[#allocation4 + $0x20] sm:$0xff] %vm320_vm1, %v900_v49 }
 0x327   :  { %v881_v35 = vpop.xlane.xlu2 %880 }
 0x328   :  { %v1745_v7 = vpop.eup %1744  ;;  %v904_v56 = vadd.f32 %v881_v35, %v856_v25 }
 0x329   :  { %1282 = vperm.xlu0 %1671, %v1745_v7   ;;  %v1238_v15 = vld [vmem:[#allocation4 + $0x28] sm:$0xff]  ;;  %v1747_v10 = vpop.eup %1746 }
 0x32a   :  { %921 = vst.msk [vmem:[#allocation4 + $0x40] sm:$0xff] %vm320_vm1, %v904_v56  ;;  %v879_v40 = vpop.xlane.xlu1 %878  ;;  %1748 = vrcp.f32 %v1238_v15  ;;  %v1167_v15 = vadd.f32 %v1151_v61, %v2310_v41  ;;  %v1161_v61 = vmul.f32 0.0, %v2300_v2 }
 0x32b   :  { %v903_v16 = vadd.f32 %v879_v40, %v855_v23  ;;  %v1024_v23 = vpop.f32.mrf.mxu2 }
 0x32c   :  { %v895_v45 = vpop.xlane.xlu0 %894  ;;  %v1237_v19 = vld [vmem:[#allocation4 + $0x20] sm:$0xff] }
 0x32d   :  { %920 = vst.msk [vmem:[#allocation4 + $0x38] sm:$0xff] %vm320_vm1, %v903_v16  ;;  %v911_v44 = vadd.f32 %v895_v45, %v863_v42  ;;  %1750 = vrcp.f32 %v1237_v19  ;;  %v1150_v45 = vmul.f32 0.0, %v2258_v29 }
 0x32e   :  { %1752 = vrcp.f32 %v1242_v6 }
 0x32f   :  { %928 = vst.msk [vmem:[#allocation4 + $0x78] sm:$0xff] %vm320_vm1, %v911_v44  ;;  %v887_v51 = vpop.xlane.xlu2 %886  ;;  %v1166_v19 = vadd.f32 %v1150_v45, %v2302_v34  ;;  %v1164_v45 = vmul.f32 0.0, %v2329_v33 }
 0x330   :  { %v1749_v12 = vpop.eup %1748  ;;  %v907_v46 = vadd.f32 %v887_v51, %v859_v31 }
 0x331   :  { %1292 = vperm.xlu1 %1669, %v1749_v12   ;;  %1297 = vperm.xlu0 %1671, %v1747_v10   ;;  %v1241_v17 = vld [vmem:[#allocation4 + $0x40] sm:$0xff]  ;;  %v1152_v10 = vmul.f32 0.0, %v2273_v39 }
 0x332   :  { %924 = vst.msk [vmem:[#allocation4 + $0x58] sm:$0xff] %vm320_vm1, %v907_v46  ;;  %v885_v62 = vpop.xlane.xlu1 %884  ;;  %1754 = vrcp.f32 %v1241_v17  ;;  %v1154_v17 = vmul.f32 0.0, %v2285_v54 }
 0x333   :  { %v1751_v22 = vpop.eup %1750  ;;  %v906_v0 = vadd.f32 %v885_v62, %v858_v47  ;;  %v1026_v57 = vpop.f32.mrf.mxu2  ;;  %v1168_v41 = vadd.f32 %v1152_v10, %v2316_v50  ;;  %v1160_v50 = vmul.f32 0.0, %v2312_v55 }
 0x334   :  { %1287 = vperm.xlu2 %1670, %v1751_v22   ;;  %v1240_v63 = vld [vmem:[#allocation4 + $0x38] sm:$0xff]  ;;  %v1753_v37 = vpop.eup %1752  ;;  %v1170_v29 = vadd.f32 %v1154_v17, %v1024_v23  ;;  %v1162_v23 = vmul.f32 0.0, %v2307_v32 }
 0x335   :  { %923 = vst.msk [vmem:[#allocation4 + $0x50] sm:$0xff] %vm320_vm1, %v906_v0  ;;  %1756 = vrcp.f32 %v1240_v63  ;;  %v1157_v0 = vmul.f32 0.0, %v2304_v30 }
 0x336   :  { %1758 = vrcp.f32 %v1245_v9  ;;  %v1248_v38 = vld [vmem:[#allocation4 + $0x78] sm:$0xff] }
 0x337   :  { %v893_v14 = vpop.xlane.xlu2 %892 }
 0x338   :  { %v1755_v48 = vpop.eup %1754  ;;  %v910_v60 = vadd.f32 %v893_v14, %v862_v18 }
 0x339   :  { %1307 = vperm.xlu1 %1669, %v1755_v48   ;;  %1312 = vperm.xlu0 %1671, %v1753_v37   ;;  %v1244_v5 = vld [vmem:[#allocation4 + $0x58] sm:$0xff]  ;;  %v1155_v48 = vmul.f32 0.0, %v2276_v58  ;;  %v1159_v58 = vmul.f32 0.0, %v2298_v1 }
 0x33a   :  { %927 = vst.msk [vmem:[#allocation4 + $0x70] sm:$0xff] %vm320_vm1, %v910_v60  ;;  %v891_v36 = vpop.xlane.xlu1 %890  ;;  %1760 = vrcp.f32 %v1244_v5  ;;  %v1156_v60 = vmul.f32 0.0, %v2282_v11 }
 0x33b   :  { %v1757_v53 = vpop.eup %1756  ;;  %v909_v49 = vadd.f32 %v891_v36, %v861_v21  ;;  %v1029_v43 = vpop.f32.mrf.mxu2  ;;  %v1171_v30 = vadd.f32 %v1155_v48, %v1026_v57  ;;  %v1163_v36 = vmul.f32 0.0, %v2318_v26 }
 0x33c   :  { %1302 = vperm.xlu2 %1670, %v1757_v53   ;;  %v1243_v20 = vld [vmem:[#allocation4 + $0x50] sm:$0xff]  ;;  %v1759_v25 = vpop.eup %1758  ;;  %v1172_v21 = vadd.f32 %v1156_v60, %v1029_v43 }
 0x33d   :  { %926 = vst.msk [vmem:[#allocation4 + $0x68] sm:$0xff] %vm320_vm1, %v909_v49  ;;  %1762 = vrcp.f32 %v1243_v20 }
 0x33e   :  { %1764 = vrcp.f32 %v1248_v38 }
 0x340   :  { %v1761_v4 = vpop.eup %1760 }
 0x341   :  { %1322 = vperm.xlu1 %1669, %v1761_v4   ;;  %1327 = vperm.xlu0 %1671, %v1759_v25   ;;  %v1247_v52 = vld [vmem:[#allocation4 + $0x70] sm:$0xff]  ;;  %v1158_v4 = vmul.f32 0.0, %v2296_v3 }
 0x342   :  { %1766 = vrcp.f32 %v1247_v52 }
 0x343   :  { %v1763_v27 = vpop.eup %1762  ;;  %v1031_v13 = vpop.f32.mrf.mxu2 }
 0x344   :  { %1317 = vperm.xlu2 %1670, %v1763_v27   ;;  %v1246_v35 = vld [vmem:[#allocation4 + $0x68] sm:$0xff]  ;;  %v1765_v7 = vpop.eup %1764  ;;  %v1173_v24 = vadd.f32 %v1157_v0, %v1031_v13 }
 0x345   :  { %1768 = vrcp.f32 %v1246_v35 }
 0x348   :  { %v1767_v56 = vpop.eup %1766 }
 0x349   :  { %1337 = vperm.xlu1 %1669, %v1767_v56   ;;  %1342 = vperm.xlu0 %1671, %v1765_v7  }
 0x34b   :  { %v1769_v40 = vpop.eup %1768  ;;  %v1273_v16 = vpop.permute.xlu2 %1272 }
 0x34c   :  { %v1346_v42 = vmul.f32 %v1273_v16, %v1167_v15  ;;  %1332 = vperm.xlu2 %1670, %v1769_v40   ;;  %v1034_v6 = vpop.f32.mrf.mxu2 }
 0x34d   :  { %v1174_v11 = vadd.f32 %v1158_v4, %v1034_v6 }
 0x34e   :  { %1362 = vst [vmem:[#allocation14 + $0x8] sm:$0xff] %v1346_v42 }
 0x354   :  { %v1036_v46 = vpop.f32.mrf.mxu2 }
 0x355   :  { %v1175_v52 = vadd.f32 %v1159_v58, %v1036_v46 }
 0x35a   :  { %v1268_v44 = vpop.permute.xlu0 %1267 }
 0x35b   :  { %v1345_v31 = vmul.f32 %v1268_v44, %v1166_v19  ;;  %v1165_v19 = vmul.f32 0.0, %v2334_v28 }
 0x35c   :  { %v1039_v47 = vpop.f32.mrf.mxu2 }
 0x35d   :  { %1361 = vst [vmem:[#allocation14] sm:$0xff] %v1345_v31  ;;  %v1176_v37 = vadd.f32 %v1160_v50, %v1039_v47 }
 0x364   :  { %v1041_v62 = vpop.f32.mrf.mxu2 }
 0x365   :  { %v1177_v15 = vadd.f32 %v1161_v61, %v1041_v62 }
 0x36c   :  { %v1044_v39 = vpop.f32.mrf.mxu2 }
 0x36d   :  { %v1178_v40 = vadd.f32 %v1162_v23, %v1044_v39 }
 0x374   :  { %v1278_v51 = vpop.permute.xlu1 %1277  ;;  %v1046_v5 = vpop.f32.mrf.mxu2 }
 0x375   :  { %v1347_v12 = vmul.f32 %v1278_v51, %v1168_v41  ;;  %v1179_v38 = vadd.f32 %v1163_v36, %v1046_v5 }
 0x377   :  { %1363 = vst [vmem:[#allocation14 + $0x10] sm:$0xff] %v1347_v12 }
 0x37c   :  { %v1049_v56 = vpop.f32.mrf.mxu2 }
 0x37d   :  { %v1180_v2 = vadd.f32 %v1164_v45, %v1049_v56 }
 0x384   :  { %v1051_v57 = vpop.f32.mrf.mxu2 }
 0x385   :  { %v1181_v32 = vadd.f32 %v1165_v19, %v1051_v57 }
 0x38e   :  { %v1288_v34 = vpop.permute.xlu2 %1287 }
 0x38f   :  { %v1349_v22 = vmul.f32 %v1288_v34, %v1170_v29 }
 0x391   :  { %1365 = vst [vmem:[#allocation14 + $0x20] sm:$0xff] %v1349_v22 }
 0x396   :  { %v1303_v63 = vpop.permute.xlu2 %1302 }
 0x397   :  { %v1352_v18 = vmul.f32 %v1303_v63, %v1173_v24 }
 0x399   :  { %1368 = vst [vmem:[#allocation14 + $0x38] sm:$0xff] %v1352_v18 }
 0x39b   :  { %v1283_v59 = vpop.permute.xlu0 %1282 }
 0x39c   :  { %v1348_v9 = vmul.f32 %v1283_v59, %v2321_v8 }
 0x39e   :  { %1364 = vst [vmem:[#allocation14 + $0x18] sm:$0xff] %v1348_v9  ;;  %v1318_v54 = vpop.permute.xlu2 %1317 }
 0x39f   :  { %v1355_v14 = vmul.f32 %v1318_v54, %v1176_v37 }
 0x3a1   :  { %1371 = vst [vmem:[#allocation14 + $0x50] sm:$0xff] %v1355_v14 }
 0x3a3   :  { %v1293_v53 = vpop.permute.xlu1 %1292  ;;  %v1298_v49 = vpop.permute.xlu0 %1297 }
 0x3a4   :  { %v1350_v55 = vmul.f32 %v1293_v53, %v1171_v30  ;;  %v1351_v20 = vmul.f32 %v1298_v49, %v1172_v21 }
 0x3a6   :  { %1366 = vst [vmem:[#allocation14 + $0x28] sm:$0xff] %v1350_v55  ;;  %v1333_v8 = vpop.permute.xlu2 %1332 }
 0x3a7   :  { %1367 = vst [vmem:[#allocation14 + $0x30] sm:$0xff] %v1351_v20  ;;  %v1358_v25 = vmul.f32 %v1333_v8, %v1179_v38 }
 0x3a9   :  { %1374 = vst [vmem:[#allocation14 + $0x68] sm:$0xff] %v1358_v25 }
 0x3ab   :  { %v1308_v27 = vpop.permute.xlu1 %1307  ;;  %v1313_v35 = vpop.permute.xlu0 %1312 }
 0x3ac   :  { %v1353_v7 = vmul.f32 %v1308_v27, %v1174_v11  ;;  %v1354_v26 = vmul.f32 %v1313_v35, %v1175_v52 }
 0x3ae   :  { %1369 = vst [vmem:[#allocation14 + $0x40] sm:$0xff] %v1353_v7 }
 0x3af   :  { %1370 = vst [vmem:[#allocation14 + $0x48] sm:$0xff] %v1354_v26 }
 0x3b3   :  { %v1323_v16 = vpop.permute.xlu1 %1322  ;;  %v1328_v3 = vpop.permute.xlu0 %1327 }
 0x3b4   :  { %v1356_v42 = vmul.f32 %v1323_v16, %v1177_v15  ;;  %v1357_v1 = vmul.f32 %v1328_v3, %v1178_v40 }
 0x3b6   :  { %1372 = vst [vmem:[#allocation14 + $0x58] sm:$0xff] %v1356_v42 }
 0x3b7   :  { %1373 = vst [vmem:[#allocation14 + $0x60] sm:$0xff] %v1357_v1 }
 0x3bb   :  { %v1338_v44 = vpop.permute.xlu1 %1337  ;;  %v1343_v31 = vpop.permute.xlu0 %1342 }
 0x3bc   :  { %v1359_v43 = vmul.f32 %v1338_v44, %v1180_v2  ;;  %v1360_v13 = vmul.f32 %v1343_v31, %v1181_v32 }
 0x3be   :  { %1375 = vst [vmem:[#allocation14 + $0x70] sm:$0xff] %v1359_v43 }
 0x3bf   :  { %1376 = vst [vmem:[#allocation14 + $0x78] sm:$0xff] %v1360_v13 }
 0x3c0   :  { %1389 = dma.vmem_to_hbm [thread:$0]  %s1382_s18, 2048, %s1384_s21, [#allocation8], %s1908_s22, %s1908_s22, %s1909_s23  }
 0x3c1   :  { %1896 = dma.done.wait [#allocation8], 2048  }
 0x3c2   :  { %1897 = vsyncadd [#allocation8], 4294965248 }
 0x3c3   :  { %1394 = vsyncpa [#allocation7], 1 }
 0x3c4   :  { %1395 = vsyncpa [#allocation10], 1 }
 0x3c5   :  { %1396 = vsyncpa [#allocation13], 1 }
 0x3c6   :  { %1397 = vsyncpa [#allocation8], 1 }

</bundles_post_ra>
